<compile_context>
chip_gen: v5e
topology: v5e:2x2
jax: 0.10.0
libtpu: 0.0.40
codegen_flags: <defaults>
</compile_context>

<pallas_src>
import functools

import jax
import jax.numpy as jnp
from jax.experimental import pallas as pl
from jax.experimental.pallas import tpu as pltpu

EPS = 1e-5


# ------------------------------ fused kernel ------------------------------

def _rfb_kernel(x_ref, rowcol_ref,
                wstem_ref, bstem_ref,
                w1b_ref, b1b_ref, w2b_ref, b2b_ref,
                w3b_ref, b3b_ref, w3c_ref, b3c_ref,
                wdw_ref, wlin_ref, blin_ref,
                o_ref, *, H, W, ip, c3a):
    HW = H * W
    x = x_ref[...]                                    # (cio, HW) channel-major

    row = rowcol_ref[0:1, :]                          # (1, HW) spatial row idx
    col = rowcol_ref[1:2, :]                          # (1, HW) spatial col idx

    def shift2d(y, dh, dw):
        """y[c, h+dh, w+dw] with zero padding, on the flattened (C, HW) map."""
        off = dh * W + dw
        z = y if off == 0 else pltpu.roll(y, (-off) % HW, axis=1)
        m = None
        if dh > 0:
            m = row < (H - dh)
        elif dh < 0:
            m = row >= (-dh)
        if dw > 0:
            mw = col < (W - dw)
            m = mw if m is None else (m & mw)
        elif dw < 0:
            mw = col >= (-dw)
            m = mw if m is None else (m & mw)
        if m is not None:
            z = jnp.where(m, z, 0.0)
        return z

    def conv3(y, w_ref, b_ref, axis):
        # (3,1) conv if axis == 0 else (1,3); padding 1.  Three shifted taps
        # are channel-concatenated and contracted in ONE matmul against the
        # tap-stacked (cout, 3*cin) weight; + folded-BN bias + ReLU.
        taps = [((t - 1, 0) if axis == 0 else (0, t - 1)) for t in range(3)]
        patches = jnp.concatenate([shift2d(y, dh, dw) for dh, dw in taps],
                                  axis=0)             # (3*cin, HW)
        out = jnp.dot(w_ref[...], patches, preferred_element_type=jnp.float32)
        return jnp.maximum(out + b_ref[...], 0.0)

    def sep3(y, branch, d):
        # Depthwise 3x3, dilation = padding = d; BN scale folded into weights,
        # BN bias folded into the ConvLinear bias (no ReLU after depthwise).
        wb = wdw_ref[branch]                          # (ip, 9)
        acc = None
        for i in range(3):
            for j in range(3):
                k = 3 * i + j
                term = shift2d(y, (i - 1) * d, (j - 1) * d) * wb[:, k:k + 1]
                acc = term if acc is None else acc + term
        return acc                                    # (ip, HW)

    # ---- four 1x1 stems fused into one matmul (+ folded BN bias, ReLU) ----
    stem = jnp.dot(wstem_ref[...], x, preferred_element_type=jnp.float32)
    stem = jnp.maximum(stem + bstem_ref[...], 0.0)    # (3*ip + c3a, HW)

    # ---- branches (all intermediates live on-chip) ----
    d0 = sep3(stem[0:ip], 0, 1)
    d1 = sep3(conv3(stem[ip:2 * ip], w1b_ref, b1b_ref, axis=0), 1, 3)
    d2 = sep3(conv3(stem[2 * ip:3 * ip], w2b_ref, b2b_ref, axis=1), 2, 3)
    y3 = conv3(stem[3 * ip:3 * ip + c3a], w3b_ref, b3b_ref, axis=1)
    y3 = conv3(y3, w3c_ref, b3c_ref, axis=0)
    d3 = sep3(y3, 3, 5)

    # ---- concat + ConvLinear (single K=4*ip matmul) + residual + ReLU ----
    cat = jnp.concatenate([d0, d1, d2, d3], axis=0)   # (4*ip, HW)
    lin = jnp.dot(wlin_ref[...], cat, preferred_element_type=jnp.float32)
    o_ref[...] = jnp.maximum(lin + blin_ref[...] + x, 0.0)


# ---------------------------- pallas_call wrapper ----------------------------

def rfb_forward(x_nchw, kparams, in_planes, out_planes):
    assert in_planes == out_planes, "residual add requires out_planes == in_planes"
    n, cio, h, w = x_nchw.shape
    ip = in_planes // 4
    c3a = ip // 2
    hw = h * w

    # Free reshape: NCHW is already contiguous as (N, C, H*W).
    x = x_nchw.reshape(n, cio, hw)

    # Precomputed (row, col) index map for the in-kernel stencil boundary masks.
    flat = jnp.arange(hw, dtype=jnp.int32)
    rowcol = jnp.stack([flat // w, flat % w], axis=0)            # (2, HW)

    names = ("wstem", "bstem", "w1b", "b1b", "w2b", "b2b",
             "w3b", "b3b", "w3c", "b3c", "wdw", "wlin", "blin")
    weights = [kparams[k] for k in names]

    def full_spec(arr):
        nd = arr.ndim
        return pl.BlockSpec(arr.shape, lambda i, _nd=nd: (0,) * _nd)

    kernel = functools.partial(_rfb_kernel, H=h, W=w, ip=ip, c3a=c3a)

    out = pl.pallas_call(
        kernel,
        out_shape=jax.ShapeDtypeStruct((n, cio, hw), jnp.float32),
        grid=(n,),
        in_specs=[pl.BlockSpec((pl.Squeezed(), cio, hw), lambda i: (i, 0, 0)),
                  full_spec(rowcol)]
                + [full_spec(a) for a in weights],
        out_specs=pl.BlockSpec((pl.Squeezed(), cio, hw), lambda i: (i, 0, 0)),
        compiler_params=pltpu.CompilerParams(dimension_semantics=("parallel",)),
    )(x, rowcol, *weights)
    return out.reshape(n, cio, h, w)


# ------------------------------ configuration ------------------------------

def rfb_config(in_planes, out_planes):
    ip = in_planes // 4
    b0 = [("conv", in_planes, ip, (1, 1), (0, 0), (1, 1), True),
          ("sep", ip, (3, 3), (1, 1), (1, 1))]
    b1 = [("conv", in_planes, ip, (1, 1), (0, 0), (1, 1), True),
          ("conv", ip, ip, (3, 1), (1, 0), (1, 1), True),
          ("sep", ip, (3, 3), (3, 3), (3, 3))]
    b2 = [("conv", in_planes, ip, (1, 1), (0, 0), (1, 1), True),
          ("conv", ip, ip, (1, 3), (0, 1), (1, 1), True),
          ("sep", ip, (3, 3), (3, 3), (3, 3))]
    b3 = [("conv", in_planes, ip // 2, (1, 1), (0, 0), (1, 1), True),
          ("conv", ip // 2, ip // 4 * 3, (1, 3), (0, 1), (1, 1), True),
          ("conv", ip // 4 * 3, ip, (3, 1), (1, 0), (1, 1), True),
          ("sep", ip, (3, 3), (5, 5), (5, 5))]
    lin = ("conv", 4 * ip, out_planes, (1, 1), (0, 0), (1, 1), False)
    return [b0, b1, b2, b3], lin


def _init_bn(key, c):
    k1, k2, k3, k4 = jax.random.split(key, 4)
    gamma = jax.random.uniform(k1, (c,), jnp.float32, 0.5, 1.5)
    beta = jax.random.normal(k2, (c,), jnp.float32) * 0.1
    mean = jax.random.normal(k3, (c,), jnp.float32) * 0.1
    var = jax.random.uniform(k4, (c,), jnp.float32, 0.5, 1.5)
    s = gamma * jax.lax.rsqrt(var + EPS)
    b = beta - mean * s
    return s, b


def init_rfb_params(key, in_planes, out_planes):
    branches_cfg, lin_cfg = rfb_config(in_planes, out_planes)
    params = {"branches": []}
    for cfg in branches_cfg:
        ps = []
        for op in cfg:
            key, kwt, kbn = jax.random.split(key, 3)
            if op[0] == "conv":
                _, cin, cout, (kh, kw), _, _, _ = op
                w = jax.random.normal(kwt, (cout, cin, kh, kw), jnp.float32) * 0.1
                s, b = _init_bn(kbn, cout)
            else:
                _, c, (kh, kw), _, _ = op
                w = jax.random.normal(kwt, (c, 1, kh, kw), jnp.float32) * 0.1
                s, b = _init_bn(kbn, c)
            ps.append(dict(w=w, s=s, b=b))
        params["branches"].append(ps)
    key, kwt, kbn = jax.random.split(key, 3)
    _, cin, cout, (kh, kw), _, _, _ = lin_cfg
    w = jax.random.normal(kwt, (cout, cin, kh, kw), jnp.float32) * 0.1
    s, b = _init_bn(kbn, cout)
    params["lin"] = dict(w=w, s=s, b=b)
    return params


def prep_kernel_params(params, in_planes, out_planes, scale=0.1):
    """One-time offline param transform: fold BN scales (and the RFB `scale`)
    into weights, pack everything channel-major."""
    ip = in_planes // 4
    br = params["branches"]

    def conv1x1_mat(p):
        return p["w"][:, :, 0, 0] * p["s"][:, None]           # (cout, cin)

    def conv3_mat(p, axis):
        # tap-stacked (cout, 3*cin) weight; tap order matches dh/dw = -1, 0, +1
        w = p["w"]
        taps = [(w[:, :, t, 0] if axis == 0 else w[:, :, 0, t]) for t in range(3)]
        return jnp.concatenate(taps, axis=1) * p["s"][:, None]

    # Fused 1x1 stems (branch heads share the input).
    wstem = jnp.concatenate([conv1x1_mat(br[i][0]) for i in range(4)], axis=0)
    bstem = jnp.concatenate([br[i][0]["b"] for i in range(4)])[:, None]

    w1b = conv3_mat(br[1][1], axis=0); b1b = br[1][1]["b"][:, None]
    w2b = conv3_mat(br[2][1], axis=1); b2b = br[2][1]["b"][:, None]
    w3b = conv3_mat(br[3][1], axis=1); b3b = br[3][1]["b"][:, None]
    w3c = conv3_mat(br[3][2], axis=0); b3c = br[3][2]["b"][:, None]

    # Depthwise 3x3 weights (scale folded), biases deferred into the linear.
    wdws, bdws = [], []
    for i in range(4):
        p = br[i][-1]
        w = p["w"][:, 0, :, :] * p["s"][:, None, None]        # (ip, 3, 3)
        wdws.append(w.reshape(ip, 9))
        bdws.append(p["b"])
    wdw = jnp.stack(wdws, axis=0)                             # (4, ip, 9)
    bdw = jnp.concatenate(bdws)                               # (4*ip,)

    lp = params["lin"]
    wlin = lp["w"][:, :, 0, 0] * lp["s"][:, None]             # (out, 4*ip)
    blin = lp["b"] + wlin @ bdw                               # (out,)
    wlin = wlin * scale                                       # fold RFB scale
    blin = (blin * scale)[:, None]                            # (out, 1)

    return dict(wstem=wstem, bstem=bstem, w1b=w1b, b1b=b1b, w2b=w2b, b2b=b2b,
                w3b=w3b, b3b=b3b, w3c=w3c, b3c=b3c, wdw=wdw, wlin=wlin,
                blin=blin)


# ------------------------- plain-JAX reference (NCHW) -------------------------

def ref_forward(x_nchw, params, in_planes, out_planes, scale=0.1):
    def conv(x, p, pad, dil, groups, relu):
        y = jax.lax.conv_general_dilated(
            x, p["w"], (1, 1), [(pad[0], pad[0]), (pad[1], pad[1])],
            rhs_dilation=dil, feature_group_count=groups,
            dimension_numbers=("NCHW", "OIHW", "NCHW"))
        y = y * p["s"][None, :, None, None] + p["b"][None, :, None, None]
        return jnp.maximum(y, 0.0) if relu else y

    branches_cfg, _ = rfb_config(in_planes, out_planes)
    outs = []
    for cfg, ps in zip(branches_cfg, params["branches"]):
        y = x_nchw
        for op, p in zip(cfg, ps):
            if op[0] == "conv":
                _, _, _, k, pad, dil, relu = op
                y = conv(y, p, pad, dil, 1, relu)
            else:
                _, c, k, pad, dil = op
                y = conv(y, p, pad, dil, c, False)
        outs.append(y)
    cat = jnp.concatenate(outs, axis=1)
    y = conv(cat, params["lin"], (0, 0), (1, 1), 1, False)
    return jnp.maximum(y * scale + x_nchw, 0.0)


# ---------------------------------- main ----------------------------------

if __name__ == "__main__":
    key = jax.random.PRNGKey(0)
    in_planes = out_planes = 16
    N, H, W = 2, 16, 16

    kx, kp = jax.random.split(key)
    x_nchw = jax.random.normal(kx, (N, in_planes, H, W), jnp.float32)
    params = init_rfb_params(kp, in_planes, out_planes)
    kparams = prep_kernel_params(params, in_planes, out_planes, scale=0.1)

    out_nchw = rfb_forward(x_nchw, kparams, in_planes, out_planes)
    jax.block_until_ready(out_nchw)

    ref = ref_forward(x_nchw, params, in_planes, out_planes, scale=0.1)
    err = float(jnp.max(jnp.abs(out_nchw - ref)))
    assert jnp.allclose(out_nchw, ref, atol=2e-3, rtol=2e-3), err

    print("KERNEL_OK")
</pallas_src>

<mosaic_0001>
module attributes {stable_mosaic.version = 11 : i64} {
  func.func @_rfb_kernel(%arg0: i32, %arg1: memref<1x16x256xf32, #tpu.memory_space<vmem>>, %arg2: memref<2x256xi32, #tpu.memory_space<vmem>>, %arg3: memref<14x16xf32, #tpu.memory_space<vmem>>, %arg4: memref<14x1xf32, #tpu.memory_space<vmem>>, %arg5: memref<4x12xf32, #tpu.memory_space<vmem>>, %arg6: memref<4x1xf32, #tpu.memory_space<vmem>>, %arg7: memref<4x12xf32, #tpu.memory_space<vmem>>, %arg8: memref<4x1xf32, #tpu.memory_space<vmem>>, %arg9: memref<3x6xf32, #tpu.memory_space<vmem>>, %arg10: memref<3x1xf32, #tpu.memory_space<vmem>>, %arg11: memref<4x9xf32, #tpu.memory_space<vmem>>, %arg12: memref<4x1xf32, #tpu.memory_space<vmem>>, %arg13: memref<4x4x9xf32, #tpu.memory_space<vmem>>, %arg14: memref<16x16xf32, #tpu.memory_space<vmem>>, %arg15: memref<16x1xf32, #tpu.memory_space<vmem>>, %arg16: memref<1x16x256xf32, #tpu.memory_space<vmem>>) attributes {dimension_semantics = [#tpu.dimension_semantics<parallel>], iteration_bounds = array<i64: 2>, scalar_prefetch = 0 : i64, scratch_operands = 0 : i64, tpu.core_type = #tpu.core_type<tc>, window_params = [{transform_indices = @transform_0, window_bounds = array<i64: 1, 16, 256>}, {pipeline_mode = #tpu.pipeline_mode<synchronous>, transform_indices = @transform_1, window_bounds = array<i64: 2, 256>}, {pipeline_mode = #tpu.pipeline_mode<synchronous>, transform_indices = @transform_2, window_bounds = array<i64: 14, 16>}, {pipeline_mode = #tpu.pipeline_mode<synchronous>, transform_indices = @transform_3, window_bounds = array<i64: 14, 1>}, {pipeline_mode = #tpu.pipeline_mode<synchronous>, transform_indices = @transform_4, window_bounds = array<i64: 4, 12>}, {pipeline_mode = #tpu.pipeline_mode<synchronous>, transform_indices = @transform_5, window_bounds = array<i64: 4, 1>}, {pipeline_mode = #tpu.pipeline_mode<synchronous>, transform_indices = @transform_6, window_bounds = array<i64: 4, 12>}, {pipeline_mode = #tpu.pipeline_mode<synchronous>, transform_indices = @transform_7, window_bounds = array<i64: 4, 1>}, {pipeline_mode = #tpu.pipeline_mode<synchronous>, transform_indices = @transform_8, window_bounds = array<i64: 3, 6>}, {pipeline_mode = #tpu.pipeline_mode<synchronous>, transform_indices = @transform_9, window_bounds = array<i64: 3, 1>}, {pipeline_mode = #tpu.pipeline_mode<synchronous>, transform_indices = @transform_10, window_bounds = array<i64: 4, 9>}, {pipeline_mode = #tpu.pipeline_mode<synchronous>, transform_indices = @transform_11, window_bounds = array<i64: 4, 1>}, {pipeline_mode = #tpu.pipeline_mode<synchronous>, transform_indices = @transform_12, window_bounds = array<i64: 4, 4, 9>}, {pipeline_mode = #tpu.pipeline_mode<synchronous>, transform_indices = @transform_13, window_bounds = array<i64: 16, 16>}, {pipeline_mode = #tpu.pipeline_mode<synchronous>, transform_indices = @transform_14, window_bounds = array<i64: 16, 1>}, {transform_indices = @transform_15, window_bounds = array<i64: 1, 16, 256>}]} {
    %c0 = arith.constant 0 : index
    %c0_0 = arith.constant 0 : index
    %c0_1 = arith.constant 0 : index
    %0 = vector.load %arg1[%c0, %c0_0, %c0_1] : memref<1x16x256xf32, #tpu.memory_space<vmem>>, vector<1x16x256xf32>
    %1 = vector.shape_cast %0 : vector<1x16x256xf32> to vector<16x256xf32>
    %c0_2 = arith.constant 0 : index
    %c0_3 = arith.constant 0 : index
    %2 = vector.load %arg2[%c0_2, %c0_3] : memref<2x256xi32, #tpu.memory_space<vmem>>, vector<1x256xi32>
    %c1 = arith.constant 1 : index
    %c0_4 = arith.constant 0 : index
    %3 = vector.load %arg2[%c1, %c0_4] : memref<2x256xi32, #tpu.memory_space<vmem>>, vector<1x256xi32>
    %c0_5 = arith.constant 0 : index
    %c0_6 = arith.constant 0 : index
    %4 = vector.load %arg3[%c0_5, %c0_6] : memref<14x16xf32, #tpu.memory_space<vmem>>, vector<14x16xf32>
    %cst = arith.constant dense<0.000000e+00> : vector<14x256xf32>
    %5 = tpu.matmul %4, %1, %cst {dimension_numbers = #tpu.dot_dimension_numbers<[1], [0], [0], [1], [0, 0, 1, 1], [], []>} : vector<14x16xf32>, vector<16x256xf32>, vector<14x256xf32> -> vector<14x256xf32>
    %c0_7 = arith.constant 0 : index
    %c0_8 = arith.constant 0 : index
    %6 = vector.load %arg4[%c0_7, %c0_8] : memref<14x1xf32, #tpu.memory_space<vmem>>, vector<14x1xf32>
    %7 = vector.broadcast %6 : vector<14x1xf32> to vector<14x256xf32>
    %8 = arith.addf %5, %7 : vector<14x256xf32>
    %cst_9 = arith.constant 0.000000e+00 : f32
    %9 = vector.broadcast %cst_9 : f32 to vector<14x256xf32>
    %10 = arith.maximumf %8, %9 : vector<14x256xf32>
    %11 = vector.extract_strided_slice %10 {offsets = [0, 0], sizes = [4, 256], strides = [1, 1]} : vector<14x256xf32> to vector<4x256xf32>
    %c0_10 = arith.constant 0 : index
    %c0_11 = arith.constant 0 : index
    %c0_12 = arith.constant 0 : index
    %12 = vector.load %arg13[%c0_10, %c0_11, %c0_12] : memref<4x4x9xf32, #tpu.memory_space<vmem>>, vector<1x4x9xf32>
    %13 = vector.shape_cast %12 : vector<1x4x9xf32> to vector<4x9xf32>
    %c17_i32 = arith.constant 17 : i32
    %14 = tpu.dynamic_rotate %11 by %c17_i32 dim 1 : vector<4x256xf32>, i32 -> vector<4x256xf32>
    %c1_i32 = arith.constant 1 : i32
    %15 = vector.broadcast %c1_i32 : i32 to vector<1x256xi32>
    %16 = arith.cmpi sge, %2, %15 : vector<1x256xi32>
    %c1_i32_13 = arith.constant 1 : i32
    %17 = vector.broadcast %c1_i32_13 : i32 to vector<1x256xi32>
    %18 = arith.cmpi sge, %3, %17 : vector<1x256xi32>
    %19 = arith.andi %16, %18 : vector<1x256xi1>
    %cst_14 = arith.constant 0.000000e+00 : f32
    %20 = vector.shape_cast %19 : vector<1x256xi1> to vector<1x256xi1>
    %21 = vector.broadcast %20 : vector<1x256xi1> to vector<4x256xi1>
    %22 = vector.broadcast %cst_14 : f32 to vector<4x256xf32>
    %23 = arith.select %21, %14, %22 : vector<4x256xi1>, vector<4x256xf32>
    %24 = vector.extract_strided_slice %13 {offsets = [0, 0], sizes = [4, 1], strides = [1, 1]} : vector<4x9xf32> to vector<4x1xf32>
    %25 = vector.broadcast %24 : vector<4x1xf32> to vector<4x256xf32>
    %26 = arith.mulf %23, %25 : vector<4x256xf32>
    %c16_i32 = arith.constant 16 : i32
    %27 = tpu.dynamic_rotate %11 by %c16_i32 dim 1 : vector<4x256xf32>, i32 -> vector<4x256xf32>
    %c1_i32_15 = arith.constant 1 : i32
    %28 = vector.broadcast %c1_i32_15 : i32 to vector<1x256xi32>
    %29 = arith.cmpi sge, %2, %28 : vector<1x256xi32>
    %cst_16 = arith.constant 0.000000e+00 : f32
    %30 = vector.shape_cast %29 : vector<1x256xi1> to vector<1x256xi1>
    %31 = vector.broadcast %30 : vector<1x256xi1> to vector<4x256xi1>
    %32 = vector.broadcast %cst_16 : f32 to vector<4x256xf32>
    %33 = arith.select %31, %27, %32 : vector<4x256xi1>, vector<4x256xf32>
    %34 = vector.extract_strided_slice %13 {offsets = [0, 1], sizes = [4, 1], strides = [1, 1]} : vector<4x9xf32> to vector<4x1xf32>
    %35 = vector.broadcast %34 : vector<4x1xf32> to vector<4x256xf32>
    %36 = arith.mulf %33, %35 : vector<4x256xf32>
    %37 = arith.addf %26, %36 : vector<4x256xf32>
    %c15_i32 = arith.constant 15 : i32
    %38 = tpu.dynamic_rotate %11 by %c15_i32 dim 1 : vector<4x256xf32>, i32 -> vector<4x256xf32>
    %c1_i32_17 = arith.constant 1 : i32
    %39 = vector.broadcast %c1_i32_17 : i32 to vector<1x256xi32>
    %40 = arith.cmpi sge, %2, %39 : vector<1x256xi32>
    %c15_i32_18 = arith.constant 15 : i32
    %41 = vector.broadcast %c15_i32_18 : i32 to vector<1x256xi32>
    %42 = arith.cmpi slt, %3, %41 : vector<1x256xi32>
    %43 = arith.andi %40, %42 : vector<1x256xi1>
    %cst_19 = arith.constant 0.000000e+00 : f32
    %44 = vector.shape_cast %43 : vector<1x256xi1> to vector<1x256xi1>
    %45 = vector.broadcast %44 : vector<1x256xi1> to vector<4x256xi1>
    %46 = vector.broadcast %cst_19 : f32 to vector<4x256xf32>
    %47 = arith.select %45, %38, %46 : vector<4x256xi1>, vector<4x256xf32>
    %48 = vector.extract_strided_slice %13 {offsets = [0, 2], sizes = [4, 1], strides = [1, 1]} : vector<4x9xf32> to vector<4x1xf32>
    %49 = vector.broadcast %48 : vector<4x1xf32> to vector<4x256xf32>
    %50 = arith.mulf %47, %49 : vector<4x256xf32>
    %51 = arith.addf %37, %50 : vector<4x256xf32>
    %c1_i32_20 = arith.constant 1 : i32
    %52 = tpu.dynamic_rotate %11 by %c1_i32_20 dim 1 : vector<4x256xf32>, i32 -> vector<4x256xf32>
    %c1_i32_21 = arith.constant 1 : i32
    %53 = vector.broadcast %c1_i32_21 : i32 to vector<1x256xi32>
    %54 = arith.cmpi sge, %3, %53 : vector<1x256xi32>
    %cst_22 = arith.constant 0.000000e+00 : f32
    %55 = vector.shape_cast %54 : vector<1x256xi1> to vector<1x256xi1>
    %56 = vector.broadcast %55 : vector<1x256xi1> to vector<4x256xi1>
    %57 = vector.broadcast %cst_22 : f32 to vector<4x256xf32>
    %58 = arith.select %56, %52, %57 : vector<4x256xi1>, vector<4x256xf32>
    %59 = vector.extract_strided_slice %13 {offsets = [0, 3], sizes = [4, 1], strides = [1, 1]} : vector<4x9xf32> to vector<4x1xf32>
    %60 = vector.broadcast %59 : vector<4x1xf32> to vector<4x256xf32>
    %61 = arith.mulf %58, %60 : vector<4x256xf32>
    %62 = arith.addf %51, %61 : vector<4x256xf32>
    %63 = vector.extract_strided_slice %13 {offsets = [0, 4], sizes = [4, 1], strides = [1, 1]} : vector<4x9xf32> to vector<4x1xf32>
    %64 = vector.broadcast %63 : vector<4x1xf32> to vector<4x256xf32>
    %65 = arith.mulf %11, %64 : vector<4x256xf32>
    %66 = arith.addf %62, %65 : vector<4x256xf32>
    %c255_i32 = arith.constant 255 : i32
    %67 = tpu.dynamic_rotate %11 by %c255_i32 dim 1 : vector<4x256xf32>, i32 -> vector<4x256xf32>
    %c15_i32_23 = arith.constant 15 : i32
    %68 = vector.broadcast %c15_i32_23 : i32 to vector<1x256xi32>
    %69 = arith.cmpi slt, %3, %68 : vector<1x256xi32>
    %cst_24 = arith.constant 0.000000e+00 : f32
    %70 = vector.shape_cast %69 : vector<1x256xi1> to vector<1x256xi1>
    %71 = vector.broadcast %70 : vector<1x256xi1> to vector<4x256xi1>
    %72 = vector.broadcast %cst_24 : f32 to vector<4x256xf32>
    %73 = arith.select %71, %67, %72 : vector<4x256xi1>, vector<4x256xf32>
    %74 = vector.extract_strided_slice %13 {offsets = [0, 5], sizes = [4, 1], strides = [1, 1]} : vector<4x9xf32> to vector<4x1xf32>
    %75 = vector.broadcast %74 : vector<4x1xf32> to vector<4x256xf32>
    %76 = arith.mulf %73, %75 : vector<4x256xf32>
    %77 = arith.addf %66, %76 : vector<4x256xf32>
    %c241_i32 = arith.constant 241 : i32
    %78 = tpu.dynamic_rotate %11 by %c241_i32 dim 1 : vector<4x256xf32>, i32 -> vector<4x256xf32>
    %c15_i32_25 = arith.constant 15 : i32
    %79 = vector.broadcast %c15_i32_25 : i32 to vector<1x256xi32>
    %80 = arith.cmpi slt, %2, %79 : vector<1x256xi32>
    %c1_i32_26 = arith.constant 1 : i32
    %81 = vector.broadcast %c1_i32_26 : i32 to vector<1x256xi32>
    %82 = arith.cmpi sge, %3, %81 : vector<1x256xi32>
    %83 = arith.andi %80, %82 : vector<1x256xi1>
    %cst_27 = arith.constant 0.000000e+00 : f32
    %84 = vector.shape_cast %83 : vector<1x256xi1> to vector<1x256xi1>
    %85 = vector.broadcast %84 : vector<1x256xi1> to vector<4x256xi1>
    %86 = vector.broadcast %cst_27 : f32 to vector<4x256xf32>
    %87 = arith.select %85, %78, %86 : vector<4x256xi1>, vector<4x256xf32>
    %88 = vector.extract_strided_slice %13 {offsets = [0, 6], sizes = [4, 1], strides = [1, 1]} : vector<4x9xf32> to vector<4x1xf32>
    %89 = vector.broadcast %88 : vector<4x1xf32> to vector<4x256xf32>
    %90 = arith.mulf %87, %89 : vector<4x256xf32>
    %91 = arith.addf %77, %90 : vector<4x256xf32>
    %c240_i32 = arith.constant 240 : i32
    %92 = tpu.dynamic_rotate %11 by %c240_i32 dim 1 : vector<4x256xf32>, i32 -> vector<4x256xf32>
    %c15_i32_28 = arith.constant 15 : i32
    %93 = vector.broadcast %c15_i32_28 : i32 to vector<1x256xi32>
    %94 = arith.cmpi slt, %2, %93 : vector<1x256xi32>
    %cst_29 = arith.constant 0.000000e+00 : f32
    %95 = vector.shape_cast %94 : vector<1x256xi1> to vector<1x256xi1>
    %96 = vector.broadcast %95 : vector<1x256xi1> to vector<4x256xi1>
    %97 = vector.broadcast %cst_29 : f32 to vector<4x256xf32>
    %98 = arith.select %96, %92, %97 : vector<4x256xi1>, vector<4x256xf32>
    %99 = vector.extract_strided_slice %13 {offsets = [0, 7], sizes = [4, 1], strides = [1, 1]} : vector<4x9xf32> to vector<4x1xf32>
    %100 = vector.broadcast %99 : vector<4x1xf32> to vector<4x256xf32>
    %101 = arith.mulf %98, %100 : vector<4x256xf32>
    %102 = arith.addf %91, %101 : vector<4x256xf32>
    %c239_i32 = arith.constant 239 : i32
    %103 = tpu.dynamic_rotate %11 by %c239_i32 dim 1 : vector<4x256xf32>, i32 -> vector<4x256xf32>
    %c15_i32_30 = arith.constant 15 : i32
    %104 = vector.broadcast %c15_i32_30 : i32 to vector<1x256xi32>
    %105 = arith.cmpi slt, %2, %104 : vector<1x256xi32>
    %c15_i32_31 = arith.constant 15 : i32
    %106 = vector.broadcast %c15_i32_31 : i32 to vector<1x256xi32>
    %107 = arith.cmpi slt, %3, %106 : vector<1x256xi32>
    %108 = arith.andi %105, %107 : vector<1x256xi1>
    %cst_32 = arith.constant 0.000000e+00 : f32
    %109 = vector.shape_cast %108 : vector<1x256xi1> to vector<1x256xi1>
    %110 = vector.broadcast %109 : vector<1x256xi1> to vector<4x256xi1>
    %111 = vector.broadcast %cst_32 : f32 to vector<4x256xf32>
    %112 = arith.select %110, %103, %111 : vector<4x256xi1>, vector<4x256xf32>
    %113 = vector.extract_strided_slice %13 {offsets = [0, 8], sizes = [4, 1], strides = [1, 1]} : vector<4x9xf32> to vector<4x1xf32>
    %114 = vector.broadcast %113 : vector<4x1xf32> to vector<4x256xf32>
    %115 = arith.mulf %112, %114 : vector<4x256xf32>
    %116 = arith.addf %102, %115 : vector<4x256xf32>
    %117 = vector.extract_strided_slice %10 {offsets = [4, 0], sizes = [4, 256], strides = [1, 1]} : vector<14x256xf32> to vector<4x256xf32>
    %c16_i32_33 = arith.constant 16 : i32
    %118 = tpu.dynamic_rotate %117 by %c16_i32_33 dim 1 : vector<4x256xf32>, i32 -> vector<4x256xf32>
    %c1_i32_34 = arith.constant 1 : i32
    %119 = vector.broadcast %c1_i32_34 : i32 to vector<1x256xi32>
    %120 = arith.cmpi sge, %2, %119 : vector<1x256xi32>
    %cst_35 = arith.constant 0.000000e+00 : f32
    %121 = vector.shape_cast %120 : vector<1x256xi1> to vector<1x256xi1>
    %122 = vector.broadcast %121 : vector<1x256xi1> to vector<4x256xi1>
    %123 = vector.broadcast %cst_35 : f32 to vector<4x256xf32>
    %124 = arith.select %122, %118, %123 : vector<4x256xi1>, vector<4x256xf32>
    %c240_i32_36 = arith.constant 240 : i32
    %125 = tpu.dynamic_rotate %117 by %c240_i32_36 dim 1 : vector<4x256xf32>, i32 -> vector<4x256xf32>
    %c15_i32_37 = arith.constant 15 : i32
    %126 = vector.broadcast %c15_i32_37 : i32 to vector<1x256xi32>
    %127 = arith.cmpi slt, %2, %126 : vector<1x256xi32>
    %cst_38 = arith.constant 0.000000e+00 : f32
    %128 = vector.shape_cast %127 : vector<1x256xi1> to vector<1x256xi1>
    %129 = vector.broadcast %128 : vector<1x256xi1> to vector<4x256xi1>
    %130 = vector.broadcast %cst_38 : f32 to vector<4x256xf32>
    %131 = arith.select %129, %125, %130 : vector<4x256xi1>, vector<4x256xf32>
    %132 = tpu.concatenate %124, %117, %131 in 0 : vector<4x256xf32>, vector<4x256xf32>, vector<4x256xf32> -> vector<12x256xf32>
    %c0_39 = arith.constant 0 : index
    %c0_40 = arith.constant 0 : index
    %133 = vector.load %arg5[%c0_39, %c0_40] : memref<4x12xf32, #tpu.memory_space<vmem>>, vector<4x12xf32>
    %cst_41 = arith.constant dense<0.000000e+00> : vector<4x256xf32>
    %134 = tpu.matmul %133, %132, %cst_41 {dimension_numbers = #tpu.dot_dimension_numbers<[1], [0], [0], [1], [0, 0, 1, 1], [], []>} : vector<4x12xf32>, vector<12x256xf32>, vector<4x256xf32> -> vector<4x256xf32>
    %c0_42 = arith.constant 0 : index
    %c0_43 = arith.constant 0 : index
    %135 = vector.load %arg6[%c0_42, %c0_43] : memref<4x1xf32, #tpu.memory_space<vmem>>, vector<4x1xf32>
    %136 = vector.broadcast %135 : vector<4x1xf32> to vector<4x256xf32>
    %137 = arith.addf %134, %136 : vector<4x256xf32>
    %cst_44 = arith.constant 0.000000e+00 : f32
    %138 = vector.broadcast %cst_44 : f32 to vector<4x256xf32>
    %139 = arith.maximumf %137, %138 : vector<4x256xf32>
    %c1_45 = arith.constant 1 : index
    %c0_46 = arith.constant 0 : index
    %c0_47 = arith.constant 0 : index
    %140 = vector.load %arg13[%c1_45, %c0_46, %c0_47] : memref<4x4x9xf32, #tpu.memory_space<vmem>>, vector<1x4x9xf32>
    %141 = vector.shape_cast %140 : vector<1x4x9xf32> to vector<4x9xf32>
    %c51_i32 = arith.constant 51 : i32
    %142 = tpu.dynamic_rotate %139 by %c51_i32 dim 1 : vector<4x256xf32>, i32 -> vector<4x256xf32>
    %c3_i32 = arith.constant 3 : i32
    %143 = vector.broadcast %c3_i32 : i32 to vector<1x256xi32>
    %144 = arith.cmpi sge, %2, %143 : vector<1x256xi32>
    %c3_i32_48 = arith.constant 3 : i32
    %145 = vector.broadcast %c3_i32_48 : i32 to vector<1x256xi32>
    %146 = arith.cmpi sge, %3, %145 : vector<1x256xi32>
    %147 = arith.andi %144, %146 : vector<1x256xi1>
    %cst_49 = arith.constant 0.000000e+00 : f32
    %148 = vector.shape_cast %147 : vector<1x256xi1> to vector<1x256xi1>
    %149 = vector.broadcast %148 : vector<1x256xi1> to vector<4x256xi1>
    %150 = vector.broadcast %cst_49 : f32 to vector<4x256xf32>
    %151 = arith.select %149, %142, %150 : vector<4x256xi1>, vector<4x256xf32>
    %152 = vector.extract_strided_slice %141 {offsets = [0, 0], sizes = [4, 1], strides = [1, 1]} : vector<4x9xf32> to vector<4x1xf32>
    %153 = vector.broadcast %152 : vector<4x1xf32> to vector<4x256xf32>
    %154 = arith.mulf %151, %153 : vector<4x256xf32>
    %c48_i32 = arith.constant 48 : i32
    %155 = tpu.dynamic_rotate %139 by %c48_i32 dim 1 : vector<4x256xf32>, i32 -> vector<4x256xf32>
    %c3_i32_50 = arith.constant 3 : i32
    %156 = vector.broadcast %c3_i32_50 : i32 to vector<1x256xi32>
    %157 = arith.cmpi sge, %2, %156 : vector<1x256xi32>
    %cst_51 = arith.constant 0.000000e+00 : f32
    %158 = vector.shape_cast %157 : vector<1x256xi1> to vector<1x256xi1>
    %159 = vector.broadcast %158 : vector<1x256xi1> to vector<4x256xi1>
    %160 = vector.broadcast %cst_51 : f32 to vector<4x256xf32>
    %161 = arith.select %159, %155, %160 : vector<4x256xi1>, vector<4x256xf32>
    %162 = vector.extract_strided_slice %141 {offsets = [0, 1], sizes = [4, 1], strides = [1, 1]} : vector<4x9xf32> to vector<4x1xf32>
    %163 = vector.broadcast %162 : vector<4x1xf32> to vector<4x256xf32>
    %164 = arith.mulf %161, %163 : vector<4x256xf32>
    %165 = arith.addf %154, %164 : vector<4x256xf32>
    %c45_i32 = arith.constant 45 : i32
    %166 = tpu.dynamic_rotate %139 by %c45_i32 dim 1 : vector<4x256xf32>, i32 -> vector<4x256xf32>
    %c3_i32_52 = arith.constant 3 : i32
    %167 = vector.broadcast %c3_i32_52 : i32 to vector<1x256xi32>
    %168 = arith.cmpi sge, %2, %167 : vector<1x256xi32>
    %c13_i32 = arith.constant 13 : i32
    %169 = vector.broadcast %c13_i32 : i32 to vector<1x256xi32>
    %170 = arith.cmpi slt, %3, %169 : vector<1x256xi32>
    %171 = arith.andi %168, %170 : vector<1x256xi1>
    %cst_53 = arith.constant 0.000000e+00 : f32
    %172 = vector.shape_cast %171 : vector<1x256xi1> to vector<1x256xi1>
    %173 = vector.broadcast %172 : vector<1x256xi1> to vector<4x256xi1>
    %174 = vector.broadcast %cst_53 : f32 to vector<4x256xf32>
    %175 = arith.select %173, %166, %174 : vector<4x256xi1>, vector<4x256xf32>
    %176 = vector.extract_strided_slice %141 {offsets = [0, 2], sizes = [4, 1], strides = [1, 1]} : vector<4x9xf32> to vector<4x1xf32>
    %177 = vector.broadcast %176 : vector<4x1xf32> to vector<4x256xf32>
    %178 = arith.mulf %175, %177 : vector<4x256xf32>
    %179 = arith.addf %165, %178 : vector<4x256xf32>
    %c3_i32_54 = arith.constant 3 : i32
    %180 = tpu.dynamic_rotate %139 by %c3_i32_54 dim 1 : vector<4x256xf32>, i32 -> vector<4x256xf32>
    %c3_i32_55 = arith.constant 3 : i32
    %181 = vector.broadcast %c3_i32_55 : i32 to vector<1x256xi32>
    %182 = arith.cmpi sge, %3, %181 : vector<1x256xi32>
    %cst_56 = arith.constant 0.000000e+00 : f32
    %183 = vector.shape_cast %182 : vector<1x256xi1> to vector<1x256xi1>
    %184 = vector.broadcast %183 : vector<1x256xi1> to vector<4x256xi1>
    %185 = vector.broadcast %cst_56 : f32 to vector<4x256xf32>
    %186 = arith.select %184, %180, %185 : vector<4x256xi1>, vector<4x256xf32>
    %187 = vector.extract_strided_slice %141 {offsets = [0, 3], sizes = [4, 1], strides = [1, 1]} : vector<4x9xf32> to vector<4x1xf32>
    %188 = vector.broadcast %187 : vector<4x1xf32> to vector<4x256xf32>
    %189 = arith.mulf %186, %188 : vector<4x256xf32>
    %190 = arith.addf %179, %189 : vector<4x256xf32>
    %191 = vector.extract_strided_slice %141 {offsets = [0, 4], sizes = [4, 1], strides = [1, 1]} : vector<4x9xf32> to vector<4x1xf32>
    %192 = vector.broadcast %191 : vector<4x1xf32> to vector<4x256xf32>
    %193 = arith.mulf %139, %192 : vector<4x256xf32>
    %194 = arith.addf %190, %193 : vector<4x256xf32>
    %c253_i32 = arith.constant 253 : i32
    %195 = tpu.dynamic_rotate %139 by %c253_i32 dim 1 : vector<4x256xf32>, i32 -> vector<4x256xf32>
    %c13_i32_57 = arith.constant 13 : i32
    %196 = vector.broadcast %c13_i32_57 : i32 to vector<1x256xi32>
    %197 = arith.cmpi slt, %3, %196 : vector<1x256xi32>
    %cst_58 = arith.constant 0.000000e+00 : f32
    %198 = vector.shape_cast %197 : vector<1x256xi1> to vector<1x256xi1>
    %199 = vector.broadcast %198 : vector<1x256xi1> to vector<4x256xi1>
    %200 = vector.broadcast %cst_58 : f32 to vector<4x256xf32>
    %201 = arith.select %199, %195, %200 : vector<4x256xi1>, vector<4x256xf32>
    %202 = vector.extract_strided_slice %141 {offsets = [0, 5], sizes = [4, 1], strides = [1, 1]} : vector<4x9xf32> to vector<4x1xf32>
    %203 = vector.broadcast %202 : vector<4x1xf32> to vector<4x256xf32>
    %204 = arith.mulf %201, %203 : vector<4x256xf32>
    %205 = arith.addf %194, %204 : vector<4x256xf32>
    %c211_i32 = arith.constant 211 : i32
    %206 = tpu.dynamic_rotate %139 by %c211_i32 dim 1 : vector<4x256xf32>, i32 -> vector<4x256xf32>
    %c13_i32_59 = arith.constant 13 : i32
    %207 = vector.broadcast %c13_i32_59 : i32 to vector<1x256xi32>
    %208 = arith.cmpi slt, %2, %207 : vector<1x256xi32>
    %c3_i32_60 = arith.constant 3 : i32
    %209 = vector.broadcast %c3_i32_60 : i32 to vector<1x256xi32>
    %210 = arith.cmpi sge, %3, %209 : vector<1x256xi32>
    %211 = arith.andi %208, %210 : vector<1x256xi1>
    %cst_61 = arith.constant 0.000000e+00 : f32
    %212 = vector.shape_cast %211 : vector<1x256xi1> to vector<1x256xi1>
    %213 = vector.broadcast %212 : vector<1x256xi1> to vector<4x256xi1>
    %214 = vector.broadcast %cst_61 : f32 to vector<4x256xf32>
    %215 = arith.select %213, %206, %214 : vector<4x256xi1>, vector<4x256xf32>
    %216 = vector.extract_strided_slice %141 {offsets = [0, 6], sizes = [4, 1], strides = [1, 1]} : vector<4x9xf32> to vector<4x1xf32>
    %217 = vector.broadcast %216 : vector<4x1xf32> to vector<4x256xf32>
    %218 = arith.mulf %215, %217 : vector<4x256xf32>
    %219 = arith.addf %205, %218 : vector<4x256xf32>
    %c208_i32 = arith.constant 208 : i32
    %220 = tpu.dynamic_rotate %139 by %c208_i32 dim 1 : vector<4x256xf32>, i32 -> vector<4x256xf32>
    %c13_i32_62 = arith.constant 13 : i32
    %221 = vector.broadcast %c13_i32_62 : i32 to vector<1x256xi32>
    %222 = arith.cmpi slt, %2, %221 : vector<1x256xi32>
    %cst_63 = arith.constant 0.000000e+00 : f32
    %223 = vector.shape_cast %222 : vector<1x256xi1> to vector<1x256xi1>
    %224 = vector.broadcast %223 : vector<1x256xi1> to vector<4x256xi1>
    %225 = vector.broadcast %cst_63 : f32 to vector<4x256xf32>
    %226 = arith.select %224, %220, %225 : vector<4x256xi1>, vector<4x256xf32>
    %227 = vector.extract_strided_slice %141 {offsets = [0, 7], sizes = [4, 1], strides = [1, 1]} : vector<4x9xf32> to vector<4x1xf32>
    %228 = vector.broadcast %227 : vector<4x1xf32> to vector<4x256xf32>
    %229 = arith.mulf %226, %228 : vector<4x256xf32>
    %230 = arith.addf %219, %229 : vector<4x256xf32>
    %c205_i32 = arith.constant 205 : i32
    %231 = tpu.dynamic_rotate %139 by %c205_i32 dim 1 : vector<4x256xf32>, i32 -> vector<4x256xf32>
    %c13_i32_64 = arith.constant 13 : i32
    %232 = vector.broadcast %c13_i32_64 : i32 to vector<1x256xi32>
    %233 = arith.cmpi slt, %2, %232 : vector<1x256xi32>
    %c13_i32_65 = arith.constant 13 : i32
    %234 = vector.broadcast %c13_i32_65 : i32 to vector<1x256xi32>
    %235 = arith.cmpi slt, %3, %234 : vector<1x256xi32>
    %236 = arith.andi %233, %235 : vector<1x256xi1>
    %cst_66 = arith.constant 0.000000e+00 : f32
    %237 = vector.shape_cast %236 : vector<1x256xi1> to vector<1x256xi1>
    %238 = vector.broadcast %237 : vector<1x256xi1> to vector<4x256xi1>
    %239 = vector.broadcast %cst_66 : f32 to vector<4x256xf32>
    %240 = arith.select %238, %231, %239 : vector<4x256xi1>, vector<4x256xf32>
    %241 = vector.extract_strided_slice %141 {offsets = [0, 8], sizes = [4, 1], strides = [1, 1]} : vector<4x9xf32> to vector<4x1xf32>
    %242 = vector.broadcast %241 : vector<4x1xf32> to vector<4x256xf32>
    %243 = arith.mulf %240, %242 : vector<4x256xf32>
    %244 = arith.addf %230, %243 : vector<4x256xf32>
    %245 = vector.extract_strided_slice %10 {offsets = [8, 0], sizes = [4, 256], strides = [1, 1]} : vector<14x256xf32> to vector<4x256xf32>
    %c1_i32_67 = arith.constant 1 : i32
    %246 = tpu.dynamic_rotate %245 by %c1_i32_67 dim 1 : vector<4x256xf32>, i32 -> vector<4x256xf32>
    %c1_i32_68 = arith.constant 1 : i32
    %247 = vector.broadcast %c1_i32_68 : i32 to vector<1x256xi32>
    %248 = arith.cmpi sge, %3, %247 : vector<1x256xi32>
    %cst_69 = arith.constant 0.000000e+00 : f32
    %249 = vector.shape_cast %248 : vector<1x256xi1> to vector<1x256xi1>
    %250 = vector.broadcast %249 : vector<1x256xi1> to vector<4x256xi1>
    %251 = vector.broadcast %cst_69 : f32 to vector<4x256xf32>
    %252 = arith.select %250, %246, %251 : vector<4x256xi1>, vector<4x256xf32>
    %c255_i32_70 = arith.constant 255 : i32
    %253 = tpu.dynamic_rotate %245 by %c255_i32_70 dim 1 : vector<4x256xf32>, i32 -> vector<4x256xf32>
    %c15_i32_71 = arith.constant 15 : i32
    %254 = vector.broadcast %c15_i32_71 : i32 to vector<1x256xi32>
    %255 = arith.cmpi slt, %3, %254 : vector<1x256xi32>
    %cst_72 = arith.constant 0.000000e+00 : f32
    %256 = vector.shape_cast %255 : vector<1x256xi1> to vector<1x256xi1>
    %257 = vector.broadcast %256 : vector<1x256xi1> to vector<4x256xi1>
    %258 = vector.broadcast %cst_72 : f32 to vector<4x256xf32>
    %259 = arith.select %257, %253, %258 : vector<4x256xi1>, vector<4x256xf32>
    %260 = tpu.concatenate %252, %245, %259 in 0 : vector<4x256xf32>, vector<4x256xf32>, vector<4x256xf32> -> vector<12x256xf32>
    %c0_73 = arith.constant 0 : index
    %c0_74 = arith.constant 0 : index
    %261 = vector.load %arg7[%c0_73, %c0_74] : memref<4x12xf32, #tpu.memory_space<vmem>>, vector<4x12xf32>
    %cst_75 = arith.constant dense<0.000000e+00> : vector<4x256xf32>
    %262 = tpu.matmul %261, %260, %cst_75 {dimension_numbers = #tpu.dot_dimension_numbers<[1], [0], [0], [1], [0, 0, 1, 1], [], []>} : vector<4x12xf32>, vector<12x256xf32>, vector<4x256xf32> -> vector<4x256xf32>
    %c0_76 = arith.constant 0 : index
    %c0_77 = arith.constant 0 : index
    %263 = vector.load %arg8[%c0_76, %c0_77] : memref<4x1xf32, #tpu.memory_space<vmem>>, vector<4x1xf32>
    %264 = vector.broadcast %263 : vector<4x1xf32> to vector<4x256xf32>
    %265 = arith.addf %262, %264 : vector<4x256xf32>
    %cst_78 = arith.constant 0.000000e+00 : f32
    %266 = vector.broadcast %cst_78 : f32 to vector<4x256xf32>
    %267 = arith.maximumf %265, %266 : vector<4x256xf32>
    %c2 = arith.constant 2 : index
    %c0_79 = arith.constant 0 : index
    %c0_80 = arith.constant 0 : index
    %268 = vector.load %arg13[%c2, %c0_79, %c0_80] : memref<4x4x9xf32, #tpu.memory_space<vmem>>, vector<1x4x9xf32>
    %269 = vector.shape_cast %268 : vector<1x4x9xf32> to vector<4x9xf32>
    %c51_i32_81 = arith.constant 51 : i32
    %270 = tpu.dynamic_rotate %267 by %c51_i32_81 dim 1 : vector<4x256xf32>, i32 -> vector<4x256xf32>
    %c3_i32_82 = arith.constant 3 : i32
    %271 = vector.broadcast %c3_i32_82 : i32 to vector<1x256xi32>
    %272 = arith.cmpi sge, %2, %271 : vector<1x256xi32>
    %c3_i32_83 = arith.constant 3 : i32
    %273 = vector.broadcast %c3_i32_83 : i32 to vector<1x256xi32>
    %274 = arith.cmpi sge, %3, %273 : vector<1x256xi32>
    %275 = arith.andi %272, %274 : vector<1x256xi1>
    %cst_84 = arith.constant 0.000000e+00 : f32
    %276 = vector.shape_cast %275 : vector<1x256xi1> to vector<1x256xi1>
    %277 = vector.broadcast %276 : vector<1x256xi1> to vector<4x256xi1>
    %278 = vector.broadcast %cst_84 : f32 to vector<4x256xf32>
    %279 = arith.select %277, %270, %278 : vector<4x256xi1>, vector<4x256xf32>
    %280 = vector.extract_strided_slice %269 {offsets = [0, 0], sizes = [4, 1], strides = [1, 1]} : vector<4x9xf32> to vector<4x1xf32>
    %281 = vector.broadcast %280 : vector<4x1xf32> to vector<4x256xf32>
    %282 = arith.mulf %279, %281 : vector<4x256xf32>
    %c48_i32_85 = arith.constant 48 : i32
    %283 = tpu.dynamic_rotate %267 by %c48_i32_85 dim 1 : vector<4x256xf32>, i32 -> vector<4x256xf32>
    %c3_i32_86 = arith.constant 3 : i32
    %284 = vector.broadcast %c3_i32_86 : i32 to vector<1x256xi32>
    %285 = arith.cmpi sge, %2, %284 : vector<1x256xi32>
    %cst_87 = arith.constant 0.000000e+00 : f32
    %286 = vector.shape_cast %285 : vector<1x256xi1> to vector<1x256xi1>
    %287 = vector.broadcast %286 : vector<1x256xi1> to vector<4x256xi1>
    %288 = vector.broadcast %cst_87 : f32 to vector<4x256xf32>
    %289 = arith.select %287, %283, %288 : vector<4x256xi1>, vector<4x256xf32>
    %290 = vector.extract_strided_slice %269 {offsets = [0, 1], sizes = [4, 1], strides = [1, 1]} : vector<4x9xf32> to vector<4x1xf32>
    %291 = vector.broadcast %290 : vector<4x1xf32> to vector<4x256xf32>
    %292 = arith.mulf %289, %291 : vector<4x256xf32>
    %293 = arith.addf %282, %292 : vector<4x256xf32>
    %c45_i32_88 = arith.constant 45 : i32
    %294 = tpu.dynamic_rotate %267 by %c45_i32_88 dim 1 : vector<4x256xf32>, i32 -> vector<4x256xf32>
    %c3_i32_89 = arith.constant 3 : i32
    %295 = vector.broadcast %c3_i32_89 : i32 to vector<1x256xi32>
    %296 = arith.cmpi sge, %2, %295 : vector<1x256xi32>
    %c13_i32_90 = arith.constant 13 : i32
    %297 = vector.broadcast %c13_i32_90 : i32 to vector<1x256xi32>
    %298 = arith.cmpi slt, %3, %297 : vector<1x256xi32>
    %299 = arith.andi %296, %298 : vector<1x256xi1>
    %cst_91 = arith.constant 0.000000e+00 : f32
    %300 = vector.shape_cast %299 : vector<1x256xi1> to vector<1x256xi1>
    %301 = vector.broadcast %300 : vector<1x256xi1> to vector<4x256xi1>
    %302 = vector.broadcast %cst_91 : f32 to vector<4x256xf32>
    %303 = arith.select %301, %294, %302 : vector<4x256xi1>, vector<4x256xf32>
    %304 = vector.extract_strided_slice %269 {offsets = [0, 2], sizes = [4, 1], strides = [1, 1]} : vector<4x9xf32> to vector<4x1xf32>
    %305 = vector.broadcast %304 : vector<4x1xf32> to vector<4x256xf32>
    %306 = arith.mulf %303, %305 : vector<4x256xf32>
    %307 = arith.addf %293, %306 : vector<4x256xf32>
    %c3_i32_92 = arith.constant 3 : i32
    %308 = tpu.dynamic_rotate %267 by %c3_i32_92 dim 1 : vector<4x256xf32>, i32 -> vector<4x256xf32>
    %c3_i32_93 = arith.constant 3 : i32
    %309 = vector.broadcast %c3_i32_93 : i32 to vector<1x256xi32>
    %310 = arith.cmpi sge, %3, %309 : vector<1x256xi32>
    %cst_94 = arith.constant 0.000000e+00 : f32
    %311 = vector.shape_cast %310 : vector<1x256xi1> to vector<1x256xi1>
    %312 = vector.broadcast %311 : vector<1x256xi1> to vector<4x256xi1>
    %313 = vector.broadcast %cst_94 : f32 to vector<4x256xf32>
    %314 = arith.select %312, %308, %313 : vector<4x256xi1>, vector<4x256xf32>
    %315 = vector.extract_strided_slice %269 {offsets = [0, 3], sizes = [4, 1], strides = [1, 1]} : vector<4x9xf32> to vector<4x1xf32>
    %316 = vector.broadcast %315 : vector<4x1xf32> to vector<4x256xf32>
    %317 = arith.mulf %314, %316 : vector<4x256xf32>
    %318 = arith.addf %307, %317 : vector<4x256xf32>
    %319 = vector.extract_strided_slice %269 {offsets = [0, 4], sizes = [4, 1], strides = [1, 1]} : vector<4x9xf32> to vector<4x1xf32>
    %320 = vector.broadcast %319 : vector<4x1xf32> to vector<4x256xf32>
    %321 = arith.mulf %267, %320 : vector<4x256xf32>
    %322 = arith.addf %318, %321 : vector<4x256xf32>
    %c253_i32_95 = arith.constant 253 : i32
    %323 = tpu.dynamic_rotate %267 by %c253_i32_95 dim 1 : vector<4x256xf32>, i32 -> vector<4x256xf32>
    %c13_i32_96 = arith.constant 13 : i32
    %324 = vector.broadcast %c13_i32_96 : i32 to vector<1x256xi32>
    %325 = arith.cmpi slt, %3, %324 : vector<1x256xi32>
    %cst_97 = arith.constant 0.000000e+00 : f32
    %326 = vector.shape_cast %325 : vector<1x256xi1> to vector<1x256xi1>
    %327 = vector.broadcast %326 : vector<1x256xi1> to vector<4x256xi1>
    %328 = vector.broadcast %cst_97 : f32 to vector<4x256xf32>
    %329 = arith.select %327, %323, %328 : vector<4x256xi1>, vector<4x256xf32>
    %330 = vector.extract_strided_slice %269 {offsets = [0, 5], sizes = [4, 1], strides = [1, 1]} : vector<4x9xf32> to vector<4x1xf32>
    %331 = vector.broadcast %330 : vector<4x1xf32> to vector<4x256xf32>
    %332 = arith.mulf %329, %331 : vector<4x256xf32>
    %333 = arith.addf %322, %332 : vector<4x256xf32>
    %c211_i32_98 = arith.constant 211 : i32
    %334 = tpu.dynamic_rotate %267 by %c211_i32_98 dim 1 : vector<4x256xf32>, i32 -> vector<4x256xf32>
    %c13_i32_99 = arith.constant 13 : i32
    %335 = vector.broadcast %c13_i32_99 : i32 to vector<1x256xi32>
    %336 = arith.cmpi slt, %2, %335 : vector<1x256xi32>
    %c3_i32_100 = arith.constant 3 : i32
    %337 = vector.broadcast %c3_i32_100 : i32 to vector<1x256xi32>
    %338 = arith.cmpi sge, %3, %337 : vector<1x256xi32>
    %339 = arith.andi %336, %338 : vector<1x256xi1>
    %cst_101 = arith.constant 0.000000e+00 : f32
    %340 = vector.shape_cast %339 : vector<1x256xi1> to vector<1x256xi1>
    %341 = vector.broadcast %340 : vector<1x256xi1> to vector<4x256xi1>
    %342 = vector.broadcast %cst_101 : f32 to vector<4x256xf32>
    %343 = arith.select %341, %334, %342 : vector<4x256xi1>, vector<4x256xf32>
    %344 = vector.extract_strided_slice %269 {offsets = [0, 6], sizes = [4, 1], strides = [1, 1]} : vector<4x9xf32> to vector<4x1xf32>
    %345 = vector.broadcast %344 : vector<4x1xf32> to vector<4x256xf32>
    %346 = arith.mulf %343, %345 : vector<4x256xf32>
    %347 = arith.addf %333, %346 : vector<4x256xf32>
    %c208_i32_102 = arith.constant 208 : i32
    %348 = tpu.dynamic_rotate %267 by %c208_i32_102 dim 1 : vector<4x256xf32>, i32 -> vector<4x256xf32>
    %c13_i32_103 = arith.constant 13 : i32
    %349 = vector.broadcast %c13_i32_103 : i32 to vector<1x256xi32>
    %350 = arith.cmpi slt, %2, %349 : vector<1x256xi32>
    %cst_104 = arith.constant 0.000000e+00 : f32
    %351 = vector.shape_cast %350 : vector<1x256xi1> to vector<1x256xi1>
    %352 = vector.broadcast %351 : vector<1x256xi1> to vector<4x256xi1>
    %353 = vector.broadcast %cst_104 : f32 to vector<4x256xf32>
    %354 = arith.select %352, %348, %353 : vector<4x256xi1>, vector<4x256xf32>
    %355 = vector.extract_strided_slice %269 {offsets = [0, 7], sizes = [4, 1], strides = [1, 1]} : vector<4x9xf32> to vector<4x1xf32>
    %356 = vector.broadcast %355 : vector<4x1xf32> to vector<4x256xf32>
    %357 = arith.mulf %354, %356 : vector<4x256xf32>
    %358 = arith.addf %347, %357 : vector<4x256xf32>
    %c205_i32_105 = arith.constant 205 : i32
    %359 = tpu.dynamic_rotate %267 by %c205_i32_105 dim 1 : vector<4x256xf32>, i32 -> vector<4x256xf32>
    %c13_i32_106 = arith.constant 13 : i32
    %360 = vector.broadcast %c13_i32_106 : i32 to vector<1x256xi32>
    %361 = arith.cmpi slt, %2, %360 : vector<1x256xi32>
    %c13_i32_107 = arith.constant 13 : i32
    %362 = vector.broadcast %c13_i32_107 : i32 to vector<1x256xi32>
    %363 = arith.cmpi slt, %3, %362 : vector<1x256xi32>
    %364 = arith.andi %361, %363 : vector<1x256xi1>
    %cst_108 = arith.constant 0.000000e+00 : f32
    %365 = vector.shape_cast %364 : vector<1x256xi1> to vector<1x256xi1>
    %366 = vector.broadcast %365 : vector<1x256xi1> to vector<4x256xi1>
    %367 = vector.broadcast %cst_108 : f32 to vector<4x256xf32>
    %368 = arith.select %366, %359, %367 : vector<4x256xi1>, vector<4x256xf32>
    %369 = vector.extract_strided_slice %269 {offsets = [0, 8], sizes = [4, 1], strides = [1, 1]} : vector<4x9xf32> to vector<4x1xf32>
    %370 = vector.broadcast %369 : vector<4x1xf32> to vector<4x256xf32>
    %371 = arith.mulf %368, %370 : vector<4x256xf32>
    %372 = arith.addf %358, %371 : vector<4x256xf32>
    %373 = vector.extract_strided_slice %10 {offsets = [12, 0], sizes = [2, 256], strides = [1, 1]} : vector<14x256xf32> to vector<2x256xf32>
    %c1_i32_109 = arith.constant 1 : i32
    %374 = tpu.dynamic_rotate %373 by %c1_i32_109 dim 1 : vector<2x256xf32>, i32 -> vector<2x256xf32>
    %c1_i32_110 = arith.constant 1 : i32
    %375 = vector.broadcast %c1_i32_110 : i32 to vector<1x256xi32>
    %376 = arith.cmpi sge, %3, %375 : vector<1x256xi32>
    %cst_111 = arith.constant 0.000000e+00 : f32
    %377 = vector.shape_cast %376 : vector<1x256xi1> to vector<1x256xi1>
    %378 = vector.broadcast %377 : vector<1x256xi1> to vector<2x256xi1>
    %379 = vector.broadcast %cst_111 : f32 to vector<2x256xf32>
    %380 = arith.select %378, %374, %379 : vector<2x256xi1>, vector<2x256xf32>
    %c255_i32_112 = arith.constant 255 : i32
    %381 = tpu.dynamic_rotate %373 by %c255_i32_112 dim 1 : vector<2x256xf32>, i32 -> vector<2x256xf32>
    %c15_i32_113 = arith.constant 15 : i32
    %382 = vector.broadcast %c15_i32_113 : i32 to vector<1x256xi32>
    %383 = arith.cmpi slt, %3, %382 : vector<1x256xi32>
    %cst_114 = arith.constant 0.000000e+00 : f32
    %384 = vector.shape_cast %383 : vector<1x256xi1> to vector<1x256xi1>
    %385 = vector.broadcast %384 : vector<1x256xi1> to vector<2x256xi1>
    %386 = vector.broadcast %cst_114 : f32 to vector<2x256xf32>
    %387 = arith.select %385, %381, %386 : vector<2x256xi1>, vector<2x256xf32>
    %388 = tpu.concatenate %380, %373, %387 in 0 : vector<2x256xf32>, vector<2x256xf32>, vector<2x256xf32> -> vector<6x256xf32>
    %c0_115 = arith.constant 0 : index
    %c0_116 = arith.constant 0 : index
    %389 = vector.load %arg9[%c0_115, %c0_116] : memref<3x6xf32, #tpu.memory_space<vmem>>, vector<3x6xf32>
    %cst_117 = arith.constant dense<0.000000e+00> : vector<3x256xf32>
    %390 = tpu.matmul %389, %388, %cst_117 {dimension_numbers = #tpu.dot_dimension_numbers<[1], [0], [0], [1], [0, 0, 1, 1], [], []>} : vector<3x6xf32>, vector<6x256xf32>, vector<3x256xf32> -> vector<3x256xf32>
    %c0_118 = arith.constant 0 : index
    %c0_119 = arith.constant 0 : index
    %391 = vector.load %arg10[%c0_118, %c0_119] : memref<3x1xf32, #tpu.memory_space<vmem>>, vector<3x1xf32>
    %392 = vector.broadcast %391 : vector<3x1xf32> to vector<3x256xf32>
    %393 = arith.addf %390, %392 : vector<3x256xf32>
    %cst_120 = arith.constant 0.000000e+00 : f32
    %394 = vector.broadcast %cst_120 : f32 to vector<3x256xf32>
    %395 = arith.maximumf %393, %394 : vector<3x256xf32>
    %c16_i32_121 = arith.constant 16 : i32
    %396 = tpu.dynamic_rotate %395 by %c16_i32_121 dim 1 : vector<3x256xf32>, i32 -> vector<3x256xf32>
    %c1_i32_122 = arith.constant 1 : i32
    %397 = vector.broadcast %c1_i32_122 : i32 to vector<1x256xi32>
    %398 = arith.cmpi sge, %2, %397 : vector<1x256xi32>
    %cst_123 = arith.constant 0.000000e+00 : f32
    %399 = vector.shape_cast %398 : vector<1x256xi1> to vector<1x256xi1>
    %400 = vector.broadcast %399 : vector<1x256xi1> to vector<3x256xi1>
    %401 = vector.broadcast %cst_123 : f32 to vector<3x256xf32>
    %402 = arith.select %400, %396, %401 : vector<3x256xi1>, vector<3x256xf32>
    %c240_i32_124 = arith.constant 240 : i32
    %403 = tpu.dynamic_rotate %395 by %c240_i32_124 dim 1 : vector<3x256xf32>, i32 -> vector<3x256xf32>
    %c15_i32_125 = arith.constant 15 : i32
    %404 = vector.broadcast %c15_i32_125 : i32 to vector<1x256xi32>
    %405 = arith.cmpi slt, %2, %404 : vector<1x256xi32>
    %cst_126 = arith.constant 0.000000e+00 : f32
    %406 = vector.shape_cast %405 : vector<1x256xi1> to vector<1x256xi1>
    %407 = vector.broadcast %406 : vector<1x256xi1> to vector<3x256xi1>
    %408 = vector.broadcast %cst_126 : f32 to vector<3x256xf32>
    %409 = arith.select %407, %403, %408 : vector<3x256xi1>, vector<3x256xf32>
    %410 = tpu.concatenate %402, %395, %409 in 0 : vector<3x256xf32>, vector<3x256xf32>, vector<3x256xf32> -> vector<9x256xf32>
    %c0_127 = arith.constant 0 : index
    %c0_128 = arith.constant 0 : index
    %411 = vector.load %arg11[%c0_127, %c0_128] : memref<4x9xf32, #tpu.memory_space<vmem>>, vector<4x9xf32>
    %cst_129 = arith.constant dense<0.000000e+00> : vector<4x256xf32>
    %412 = tpu.matmul %411, %410, %cst_129 {dimension_numbers = #tpu.dot_dimension_numbers<[1], [0], [0], [1], [0, 0, 1, 1], [], []>} : vector<4x9xf32>, vector<9x256xf32>, vector<4x256xf32> -> vector<4x256xf32>
    %c0_130 = arith.constant 0 : index
    %c0_131 = arith.constant 0 : index
    %413 = vector.load %arg12[%c0_130, %c0_131] : memref<4x1xf32, #tpu.memory_space<vmem>>, vector<4x1xf32>
    %414 = vector.broadcast %413 : vector<4x1xf32> to vector<4x256xf32>
    %415 = arith.addf %412, %414 : vector<4x256xf32>
    %cst_132 = arith.constant 0.000000e+00 : f32
    %416 = vector.broadcast %cst_132 : f32 to vector<4x256xf32>
    %417 = arith.maximumf %415, %416 : vector<4x256xf32>
    %c3 = arith.constant 3 : index
    %c0_133 = arith.constant 0 : index
    %c0_134 = arith.constant 0 : index
    %418 = vector.load %arg13[%c3, %c0_133, %c0_134] : memref<4x4x9xf32, #tpu.memory_space<vmem>>, vector<1x4x9xf32>
    %419 = vector.shape_cast %418 : vector<1x4x9xf32> to vector<4x9xf32>
    %c85_i32 = arith.constant 85 : i32
    %420 = tpu.dynamic_rotate %417 by %c85_i32 dim 1 : vector<4x256xf32>, i32 -> vector<4x256xf32>
    %c5_i32 = arith.constant 5 : i32
    %421 = vector.broadcast %c5_i32 : i32 to vector<1x256xi32>
    %422 = arith.cmpi sge, %2, %421 : vector<1x256xi32>
    %c5_i32_135 = arith.constant 5 : i32
    %423 = vector.broadcast %c5_i32_135 : i32 to vector<1x256xi32>
    %424 = arith.cmpi sge, %3, %423 : vector<1x256xi32>
    %425 = arith.andi %422, %424 : vector<1x256xi1>
    %cst_136 = arith.constant 0.000000e+00 : f32
    %426 = vector.shape_cast %425 : vector<1x256xi1> to vector<1x256xi1>
    %427 = vector.broadcast %426 : vector<1x256xi1> to vector<4x256xi1>
    %428 = vector.broadcast %cst_136 : f32 to vector<4x256xf32>
    %429 = arith.select %427, %420, %428 : vector<4x256xi1>, vector<4x256xf32>
    %430 = vector.extract_strided_slice %419 {offsets = [0, 0], sizes = [4, 1], strides = [1, 1]} : vector<4x9xf32> to vector<4x1xf32>
    %431 = vector.broadcast %430 : vector<4x1xf32> to vector<4x256xf32>
    %432 = arith.mulf %429, %431 : vector<4x256xf32>
    %c80_i32 = arith.constant 80 : i32
    %433 = tpu.dynamic_rotate %417 by %c80_i32 dim 1 : vector<4x256xf32>, i32 -> vector<4x256xf32>
    %c5_i32_137 = arith.constant 5 : i32
    %434 = vector.broadcast %c5_i32_137 : i32 to vector<1x256xi32>
    %435 = arith.cmpi sge, %2, %434 : vector<1x256xi32>
    %cst_138 = arith.constant 0.000000e+00 : f32
    %436 = vector.shape_cast %435 : vector<1x256xi1> to vector<1x256xi1>
    %437 = vector.broadcast %436 : vector<1x256xi1> to vector<4x256xi1>
    %438 = vector.broadcast %cst_138 : f32 to vector<4x256xf32>
    %439 = arith.select %437, %433, %438 : vector<4x256xi1>, vector<4x256xf32>
    %440 = vector.extract_strided_slice %419 {offsets = [0, 1], sizes = [4, 1], strides = [1, 1]} : vector<4x9xf32> to vector<4x1xf32>
    %441 = vector.broadcast %440 : vector<4x1xf32> to vector<4x256xf32>
    %442 = arith.mulf %439, %441 : vector<4x256xf32>
    %443 = arith.addf %432, %442 : vector<4x256xf32>
    %c75_i32 = arith.constant 75 : i32
    %444 = tpu.dynamic_rotate %417 by %c75_i32 dim 1 : vector<4x256xf32>, i32 -> vector<4x256xf32>
    %c5_i32_139 = arith.constant 5 : i32
    %445 = vector.broadcast %c5_i32_139 : i32 to vector<1x256xi32>
    %446 = arith.cmpi sge, %2, %445 : vector<1x256xi32>
    %c11_i32 = arith.constant 11 : i32
    %447 = vector.broadcast %c11_i32 : i32 to vector<1x256xi32>
    %448 = arith.cmpi slt, %3, %447 : vector<1x256xi32>
    %449 = arith.andi %446, %448 : vector<1x256xi1>
    %cst_140 = arith.constant 0.000000e+00 : f32
    %450 = vector.shape_cast %449 : vector<1x256xi1> to vector<1x256xi1>
    %451 = vector.broadcast %450 : vector<1x256xi1> to vector<4x256xi1>
    %452 = vector.broadcast %cst_140 : f32 to vector<4x256xf32>
    %453 = arith.select %451, %444, %452 : vector<4x256xi1>, vector<4x256xf32>
    %454 = vector.extract_strided_slice %419 {offsets = [0, 2], sizes = [4, 1], strides = [1, 1]} : vector<4x9xf32> to vector<4x1xf32>
    %455 = vector.broadcast %454 : vector<4x1xf32> to vector<4x256xf32>
    %456 = arith.mulf %453, %455 : vector<4x256xf32>
    %457 = arith.addf %443, %456 : vector<4x256xf32>
    %c5_i32_141 = arith.constant 5 : i32
    %458 = tpu.dynamic_rotate %417 by %c5_i32_141 dim 1 : vector<4x256xf32>, i32 -> vector<4x256xf32>
    %c5_i32_142 = arith.constant 5 : i32
    %459 = vector.broadcast %c5_i32_142 : i32 to vector<1x256xi32>
    %460 = arith.cmpi sge, %3, %459 : vector<1x256xi32>
    %cst_143 = arith.constant 0.000000e+00 : f32
    %461 = vector.shape_cast %460 : vector<1x256xi1> to vector<1x256xi1>
    %462 = vector.broadcast %461 : vector<1x256xi1> to vector<4x256xi1>
    %463 = vector.broadcast %cst_143 : f32 to vector<4x256xf32>
    %464 = arith.select %462, %458, %463 : vector<4x256xi1>, vector<4x256xf32>
    %465 = vector.extract_strided_slice %419 {offsets = [0, 3], sizes = [4, 1], strides = [1, 1]} : vector<4x9xf32> to vector<4x1xf32>
    %466 = vector.broadcast %465 : vector<4x1xf32> to vector<4x256xf32>
    %467 = arith.mulf %464, %466 : vector<4x256xf32>
    %468 = arith.addf %457, %467 : vector<4x256xf32>
    %469 = vector.extract_strided_slice %419 {offsets = [0, 4], sizes = [4, 1], strides = [1, 1]} : vector<4x9xf32> to vector<4x1xf32>
    %470 = vector.broadcast %469 : vector<4x1xf32> to vector<4x256xf32>
    %471 = arith.mulf %417, %470 : vector<4x256xf32>
    %472 = arith.addf %468, %471 : vector<4x256xf32>
    %c251_i32 = arith.constant 251 : i32
    %473 = tpu.dynamic_rotate %417 by %c251_i32 dim 1 : vector<4x256xf32>, i32 -> vector<4x256xf32>
    %c11_i32_144 = arith.constant 11 : i32
    %474 = vector.broadcast %c11_i32_144 : i32 to vector<1x256xi32>
    %475 = arith.cmpi slt, %3, %474 : vector<1x256xi32>
    %cst_145 = arith.constant 0.000000e+00 : f32
    %476 = vector.shape_cast %475 : vector<1x256xi1> to vector<1x256xi1>
    %477 = vector.broadcast %476 : vector<1x256xi1> to vector<4x256xi1>
    %478 = vector.broadcast %cst_145 : f32 to vector<4x256xf32>
    %479 = arith.select %477, %473, %478 : vector<4x256xi1>, vector<4x256xf32>
    %480 = vector.extract_strided_slice %419 {offsets = [0, 5], sizes = [4, 1], strides = [1, 1]} : vector<4x9xf32> to vector<4x1xf32>
    %481 = vector.broadcast %480 : vector<4x1xf32> to vector<4x256xf32>
    %482 = arith.mulf %479, %481 : vector<4x256xf32>
    %483 = arith.addf %472, %482 : vector<4x256xf32>
    %c181_i32 = arith.constant 181 : i32
    %484 = tpu.dynamic_rotate %417 by %c181_i32 dim 1 : vector<4x256xf32>, i32 -> vector<4x256xf32>
    %c11_i32_146 = arith.constant 11 : i32
    %485 = vector.broadcast %c11_i32_146 : i32 to vector<1x256xi32>
    %486 = arith.cmpi slt, %2, %485 : vector<1x256xi32>
    %c5_i32_147 = arith.constant 5 : i32
    %487 = vector.broadcast %c5_i32_147 : i32 to vector<1x256xi32>
    %488 = arith.cmpi sge, %3, %487 : vector<1x256xi32>
    %489 = arith.andi %486, %488 : vector<1x256xi1>
    %cst_148 = arith.constant 0.000000e+00 : f32
    %490 = vector.shape_cast %489 : vector<1x256xi1> to vector<1x256xi1>
    %491 = vector.broadcast %490 : vector<1x256xi1> to vector<4x256xi1>
    %492 = vector.broadcast %cst_148 : f32 to vector<4x256xf32>
    %493 = arith.select %491, %484, %492 : vector<4x256xi1>, vector<4x256xf32>
    %494 = vector.extract_strided_slice %419 {offsets = [0, 6], sizes = [4, 1], strides = [1, 1]} : vector<4x9xf32> to vector<4x1xf32>
    %495 = vector.broadcast %494 : vector<4x1xf32> to vector<4x256xf32>
    %496 = arith.mulf %493, %495 : vector<4x256xf32>
    %497 = arith.addf %483, %496 : vector<4x256xf32>
    %c176_i32 = arith.constant 176 : i32
    %498 = tpu.dynamic_rotate %417 by %c176_i32 dim 1 : vector<4x256xf32>, i32 -> vector<4x256xf32>
    %c11_i32_149 = arith.constant 11 : i32
    %499 = vector.broadcast %c11_i32_149 : i32 to vector<1x256xi32>
    %500 = arith.cmpi slt, %2, %499 : vector<1x256xi32>
    %cst_150 = arith.constant 0.000000e+00 : f32
    %501 = vector.shape_cast %500 : vector<1x256xi1> to vector<1x256xi1>
    %502 = vector.broadcast %501 : vector<1x256xi1> to vector<4x256xi1>
    %503 = vector.broadcast %cst_150 : f32 to vector<4x256xf32>
    %504 = arith.select %502, %498, %503 : vector<4x256xi1>, vector<4x256xf32>
    %505 = vector.extract_strided_slice %419 {offsets = [0, 7], sizes = [4, 1], strides = [1, 1]} : vector<4x9xf32> to vector<4x1xf32>
    %506 = vector.broadcast %505 : vector<4x1xf32> to vector<4x256xf32>
    %507 = arith.mulf %504, %506 : vector<4x256xf32>
    %508 = arith.addf %497, %507 : vector<4x256xf32>
    %c171_i32 = arith.constant 171 : i32
    %509 = tpu.dynamic_rotate %417 by %c171_i32 dim 1 : vector<4x256xf32>, i32 -> vector<4x256xf32>
    %c11_i32_151 = arith.constant 11 : i32
    %510 = vector.broadcast %c11_i32_151 : i32 to vector<1x256xi32>
    %511 = arith.cmpi slt, %2, %510 : vector<1x256xi32>
    %c11_i32_152 = arith.constant 11 : i32
    %512 = vector.broadcast %c11_i32_152 : i32 to vector<1x256xi32>
    %513 = arith.cmpi slt, %3, %512 : vector<1x256xi32>
    %514 = arith.andi %511, %513 : vector<1x256xi1>
    %cst_153 = arith.constant 0.000000e+00 : f32
    %515 = vector.shape_cast %514 : vector<1x256xi1> to vector<1x256xi1>
    %516 = vector.broadcast %515 : vector<1x256xi1> to vector<4x256xi1>
    %517 = vector.broadcast %cst_153 : f32 to vector<4x256xf32>
    %518 = arith.select %516, %509, %517 : vector<4x256xi1>, vector<4x256xf32>
    %519 = vector.extract_strided_slice %419 {offsets = [0, 8], sizes = [4, 1], strides = [1, 1]} : vector<4x9xf32> to vector<4x1xf32>
    %520 = vector.broadcast %519 : vector<4x1xf32> to vector<4x256xf32>
    %521 = arith.mulf %518, %520 : vector<4x256xf32>
    %522 = arith.addf %508, %521 : vector<4x256xf32>
    %523 = tpu.concatenate %116, %244, %372, %522 in 0 : vector<4x256xf32>, vector<4x256xf32>, vector<4x256xf32>, vector<4x256xf32> -> vector<16x256xf32>
    %c0_154 = arith.constant 0 : index
    %c0_155 = arith.constant 0 : index
    %524 = vector.load %arg14[%c0_154, %c0_155] : memref<16x16xf32, #tpu.memory_space<vmem>>, vector<16x16xf32>
    %cst_156 = arith.constant dense<0.000000e+00> : vector<16x256xf32>
    %525 = tpu.matmul %524, %523, %cst_156 {dimension_numbers = #tpu.dot_dimension_numbers<[1], [0], [0], [1], [0, 0, 1, 1], [], []>} : vector<16x16xf32>, vector<16x256xf32>, vector<16x256xf32> -> vector<16x256xf32>
    %c0_157 = arith.constant 0 : index
    %c0_158 = arith.constant 0 : index
    %526 = vector.load %arg15[%c0_157, %c0_158] : memref<16x1xf32, #tpu.memory_space<vmem>>, vector<16x1xf32>
    %527 = vector.broadcast %526 : vector<16x1xf32> to vector<16x256xf32>
    %528 = arith.addf %525, %527 : vector<16x256xf32>
    %529 = arith.addf %528, %1 : vector<16x256xf32>
    %cst_159 = arith.constant 0.000000e+00 : f32
    %530 = vector.broadcast %cst_159 : f32 to vector<16x256xf32>
    %531 = arith.maximumf %529, %530 : vector<16x256xf32>
    %c0_160 = arith.constant 0 : index
    %c0_161 = arith.constant 0 : index
    %c0_162 = arith.constant 0 : index
    %532 = vector.load %arg16[%c0_160, %c0_161, %c0_162] : memref<1x16x256xf32, #tpu.memory_space<vmem>>, vector<1x16x256xf32>
    %533 = vector.shape_cast %532 : vector<1x16x256xf32> to vector<16x256xf32>
    %534 = vector.shape_cast %531 : vector<16x256xf32> to vector<1x16x256xf32>
    tpu.vector_store %arg16[%c0_160, %c0_161, %c0_162], %534 {strides = array<i32>} : memref<1x16x256xf32, #tpu.memory_space<vmem>>, vector<1x16x256xf32>,
    return
  }
  func.func @transform_0(%arg0: i32) -> (i32, i32, i32) {
    %c0_i32 = arith.constant 0 : i32
    %c0_i32_0 = arith.constant 0 : i32
    %c0_i32_1 = arith.constant 0 : i32
    return %arg0, %c0_i32, %c0_i32_0 : i32, i32, i32
  }
  func.func @transform_1(%arg0: i32) -> (i32, i32) {
    %c0_i32 = arith.constant 0 : i32
    %c0_i32_0 = arith.constant 0 : i32
    %c0_i32_1 = arith.constant 0 : i32
    return %c0_i32, %c0_i32_0 : i32, i32
  }
  func.func @transform_2(%arg0: i32) -> (i32, i32) {
    %c0_i32 = arith.constant 0 : i32
    %c0_i32_0 = arith.constant 0 : i32
    %c0_i32_1 = arith.constant 0 : i32
    return %c0_i32, %c0_i32_0 : i32, i32
  }
  func.func @transform_3(%arg0: i32) -> (i32, i32) {
    %c0_i32 = arith.constant 0 : i32
    %c0_i32_0 = arith.constant 0 : i32
    %c0_i32_1 = arith.constant 0 : i32
    return %c0_i32, %c0_i32_0 : i32, i32
  }
  func.func @transform_4(%arg0: i32) -> (i32, i32) {
    %c0_i32 = arith.constant 0 : i32
    %c0_i32_0 = arith.constant 0 : i32
    %c0_i32_1 = arith.constant 0 : i32
    return %c0_i32, %c0_i32_0 : i32, i32
  }
  func.func @transform_5(%arg0: i32) -> (i32, i32) {
    %c0_i32 = arith.constant 0 : i32
    %c0_i32_0 = arith.constant 0 : i32
    %c0_i32_1 = arith.constant 0 : i32
    return %c0_i32, %c0_i32_0 : i32, i32
  }
  func.func @transform_6(%arg0: i32) -> (i32, i32) {
    %c0_i32 = arith.constant 0 : i32
    %c0_i32_0 = arith.constant 0 : i32
    %c0_i32_1 = arith.constant 0 : i32
    return %c0_i32, %c0_i32_0 : i32, i32
  }
  func.func @transform_7(%arg0: i32) -> (i32, i32) {
    %c0_i32 = arith.constant 0 : i32
    %c0_i32_0 = arith.constant 0 : i32
    %c0_i32_1 = arith.constant 0 : i32
    return %c0_i32, %c0_i32_0 : i32, i32
  }
  func.func @transform_8(%arg0: i32) -> (i32, i32) {
    %c0_i32 = arith.constant 0 : i32
    %c0_i32_0 = arith.constant 0 : i32
    %c0_i32_1 = arith.constant 0 : i32
    return %c0_i32, %c0_i32_0 : i32, i32
  }
  func.func @transform_9(%arg0: i32) -> (i32, i32) {
    %c0_i32 = arith.constant 0 : i32
    %c0_i32_0 = arith.constant 0 : i32
    %c0_i32_1 = arith.constant 0 : i32
    return %c0_i32, %c0_i32_0 : i32, i32
  }
  func.func @transform_10(%arg0: i32) -> (i32, i32) {
    %c0_i32 = arith.constant 0 : i32
    %c0_i32_0 = arith.constant 0 : i32
    %c0_i32_1 = arith.constant 0 : i32
    return %c0_i32, %c0_i32_0 : i32, i32
  }
  func.func @transform_11(%arg0: i32) -> (i32, i32) {
    %c0_i32 = arith.constant 0 : i32
    %c0_i32_0 = arith.constant 0 : i32
    %c0_i32_1 = arith.constant 0 : i32
    return %c0_i32, %c0_i32_0 : i32, i32
  }
  func.func @transform_12(%arg0: i32) -> (i32, i32, i32) {
    %c0_i32 = arith.constant 0 : i32
    %c0_i32_0 = arith.constant 0 : i32
    %c0_i32_1 = arith.constant 0 : i32
    %c0_i32_2 = arith.constant 0 : i32
    return %c0_i32, %c0_i32_0, %c0_i32_1 : i32, i32, i32
  }
  func.func @transform_13(%arg0: i32) -> (i32, i32) {
    %c0_i32 = arith.constant 0 : i32
    %c0_i32_0 = arith.constant 0 : i32
    %c0_i32_1 = arith.constant 0 : i32
    return %c0_i32, %c0_i32_0 : i32, i32
  }
  func.func @transform_14(%arg0: i32) -> (i32, i32) {
    %c0_i32 = arith.constant 0 : i32
    %c0_i32_0 = arith.constant 0 : i32
    %c0_i32_1 = arith.constant 0 : i32
    return %c0_i32, %c0_i32_0 : i32, i32
  }
  func.func @transform_15(%arg0: i32) -> (i32, i32, i32) {
    %c0_i32 = arith.constant 0 : i32
    %c0_i32_0 = arith.constant 0 : i32
    %c0_i32_1 = arith.constant 0 : i32
    return %arg0, %c0_i32, %c0_i32_0 : i32, i32, i32
  }
}

</mosaic_0001>

<bundles_post_ra>
// kernel: tpu_custom_call.1
= control target key start
LH: loop header
LB: loop body
LE: loop exit
PB: predicated region body
PF: predicated region fallthrough
CT: control target
= control target key end

     0   :  { %s3530_s0 = inlined_call_operand.hbm [shape: f32[2,16,256], index: 0, kind: input, shape index: {}]   ;;  %s3531_s1 = inlined_call_operand.vmem [shape: s32[2,256], index: 1, kind: input, shape index: {}]   ;;  %s3532_s2 = inlined_call_operand.vmem [shape: f32[14,16], index: 2, kind: input, shape index: {}]   ;;  %s3533_s3 = inlined_call_operand.vmem [shape: f32[14,1], index: 3, kind: input, shape index: {}]   ;;  %s3534_s4 = inlined_call_operand.vmem [shape: f32[4,12], index: 4, kind: input, shape index: {}]   ;;  %s3535_s5 = inlined_call_operand.vmem [shape: f32[4,1], index: 5, kind: input, shape index: {}]   ;;  %s3536_s6 = inlined_call_operand.vmem [shape: f32[4,12], index: 6, kind: input, shape index: {}]   ;;  %s3537_s7 = inlined_call_operand.vmem [shape: f32[4,1], index: 7, kind: input, shape index: {}]   ;;  %s3538_s8 = inlined_call_operand.vmem [shape: f32[3,6], index: 8, kind: input, shape index: {}]   ;;  %s3539_s9 = inlined_call_operand.vmem [shape: f32[3,1], index: 9, kind: input, shape index: {}]   ;;  %s3540_s10 = inlined_call_operand.vmem [shape: f32[4,9], index: 10, kind: input, shape index: {}]   ;;  %s3541_s11 = inlined_call_operand.vmem [shape: f32[4,1], index: 11, kind: input, shape index: {}]   ;;  %s3542_s12 = inlined_call_operand.vmem [shape: f32[4,4,9], index: 12, kind: input, shape index: {}]   ;;  %s3543_s13 = inlined_call_operand.hbm [shape: f32[16,16], index: 13, kind: input, shape index: {}]   ;;  %s3544_s14 = inlined_call_operand.vmem [shape: f32[16,1], index: 14, kind: input, shape index: {}]   ;;  %s3545_s15 = inlined_call_operand.hbm [shape: f32[2,16,256], index: 15, kind: output, shape index: {}]  }
   0x1   :  { %3573 = sst [smem:[#allocation16_spill]] %s3530_s0 }
   0x2   :  { %3574 = sst [smem:[#allocation17_spill]] %s3540_s10 }
   0x3   :  { %3575 = sst [smem:[#allocation18_spill]] %s3543_s13 }
   0x4   :  { %3576 = sst [smem:[#allocation19_spill]] %s3544_s14 }
   0x5   :  { %3577 = sst [smem:[#allocation20_spill]] %s3545_s15 }
   0x6   :  { %20 = vsyncpa [#allocation3], 0 }
   0x7   :  { %22 = vsyncpa [#allocation3 + $0x1], 0 }
   0x8   :  { %23 = vsyncpa [#allocation6], 0 }
   0x9   :  { %24 = vsyncpa [#allocation4], 0 }
   0xa   :  { %26 = vsyncpa [#allocation4 + $0x1], 0  ;;  %s2314_s18 = smov 0   ;;  %s2316_s19 = smov 0  }
   0xb   :  { %s2318_s20 = smov 0   ;;  %s2320_s21 = smov 0  }
   0xc LB: > { %3578 = sst [smem:[#allocation11_spill]] %s2183_s18  ;;  %s2335_s22 = sadd.s32 4294967295, %s2195_s21   ;;  %s2195_s21 = sphi %s2320_s21, %s3724_s21   ;;  %s2191_s20 = sphi %s2318_s20, %s3729_s20   ;;  %s2187_s19 = sphi %s2316_s19, %s3728_s19   ;;  %s2183_s18 = sphi %s2314_s18, %s3727_s18  }
   0xd   : > { %3579 = sst [smem:[#allocation12_spill]] %s2191_s20  ;;  %s1866_s23 = sadd.s32 4294967294, %s2195_s21  }
   0xe   : > { %p52_p0 = scmp.ne.s32.totalorder %s2187_s19, %s2183_s18  ;;  %p53_p1 = scmp.eq.s32.totalorder %s2335_s22, 0 }
   0xf   : > { %p370_p2 = scmp.eq.s32.totalorder %s2335_s22, 1  ;;  %p376_p3 = scmp.eq.s32.totalorder %s1866_s23, 1 }
  0x10   : > { %p2344_p4 = por %p53_p1, %p52_p0  ;;  %p1867_p5 = scmp.ge.s32.totalorder %s2195_s21, 1 }
  0x11   : > { %p2349_p6 = por %p376_p3, %p52_p0  ;;  %p383_p7 = scmp.lt.s32.totalorder %s2195_s21, 3 }
  0x12   : > { %s3583_s13 = sld [smem:[#allocation18_spill]]  ;;  %s2197_s30 = smov [#allocation5]  }
  0x13   : > { %s3581_s25 = scalar_select %p2349_p6, 1, 0 }
  0x14   : > { %p2357_p8 = pnand %p1867_p5, %p383_p7  ;;  %s432_s16 = sshll.u32 %s2197_s30, 4  ;;  %s433_s16 = int_to_ptr.vmem [resolvable:$true] %s432_s16 }
  0x15   : > { %3582 = sst [smem:[#allocation13_spill]] %s3581_s25  ;;  %s2367_s17 = sadd.s32 1, %s2195_s21  }
  0x16   : > { %p1924_p9 = pneg %p2357_p8  ;;  %3585 = sst [smem:[#allocation14_spill]] %s2367_s17 }
  0x17   : > { %s2198_s23 = smov 128   ;;  %s2199_s26 = smov 8  }
  0x18   : > { %s430_s28 = sshll.u32 %s3583_s13, 4  ;;  %p1925_p10 = pnand %p1924_p9, %p53_p1  ;;  %s431_s28 = int_to_ptr.hbm [resolvable:$true] %s430_s28 }
  0x19   : > { %s36_s27 = ssub.s32 %s2195_s21, %s2367_s17  ;;  %s39_s13 = sadd.s32 1, %s2191_s20 }
  0x1a   : > { %1927 = dma.hbm_to_vmem [thread:$0]  (!%p1925_p10), %s431_s28, 256, %s433_s16, [#allocation6], %s2198_s23, %s2198_s23, %s2199_s26  }
  0x1b   : > { %p37_p12 = scmp.eq.s32.totalorder %s36_s27, 0  ;;  %p46_p13 = scmp.ne.s32.totalorder %s2191_s20, %s2187_s19 }
  0x1c   : > { %p47_p0 = scmp.eq.s32.totalorder %s2195_s21, 0  ;;  %p1937_p3 = scmp.lt.s32.totalorder %s2195_s21, 2 }
  0x1d   : > { %s2377_s30 = scalar_select %p37_p12, %s2191_s20, %s39_s13  }
  0x1e   : > { %p48_p5 = por %p47_p0, %p46_p13  ;;  %p2381_p7 = por %p370_p2, %p46_p13 }
  0x1f   : > { %3586 = sst [smem:[#allocation15_spill]] %s2377_s30  ;;  %s449_s18 = sand.u32 1, %s2191_s20  }
  0x20   : > { %s1910_s15 = sshll.u32 %s2195_s21, 5  ;;  %s1870_s14 = sshll.u32 %s449_s18, 5 }
  0x21   : > { %s3588_s0 = sld [smem:[#allocation16_spill]]  ;;  %s453_s26 = scalar_lea.vmem [#allocation2], %s1870_s14 }
  0x22   : > { %s461_s27 = sshll.u32 %s453_s26, 4  ;;  %p2392_p9 = pnand %p1937_p3, %p48_p5  ;;  %s462_s27 = int_to_ptr.vmem [resolvable:$true] %s461_s27 }
  0x23   : > { %s450_s30 = scalar_lea.sflag [#allocation3], %s449_s18 }
  0x24   : > { %p2099_p10 = pneg %p2392_p9 }
  0x27   : > { %s458_s16 = scalar_lea.hbm %s3588_s0, %s1910_s15  ;;  %s2102_s15 = scalar_lea.hbm %s3588_s0, 64 }
  0x28   : > { %s459_s23 = sshll.u32 %s458_s16, 4  ;;  %s460_s23 = int_to_ptr.hbm [resolvable:$true] %s459_s23 }
  0x29   : > { %s2095_s17 = sshra.s32 %s460_s23, 4  ;;  %s2096_s17 = int_to_ptr.hbm [resolvable:$true] %s2095_s17 }
  0x2a   : > { %s2097_s20 = scalar_lea.hbm %s2096_s17, 32  ;;  %p2103_p0 = scmp.lt.s32.totalorder %s2096_s17, %s3588_s0 }
  0x2b   : > { %p2098_p2 = scmp.ne.s32.totalorder %s2096_s17, %s2097_s20  ;;  %p2104_p3 = scmp.lt.s32.totalorder %s2102_s15, %s2097_s20 }
  0x2d   : > { %p2100_p12 = pnand %p2099_p10, %p2098_p2  ;;  %p2105_p5 = por %p2104_p3, %p2103_p0 }
  0x2f   : > { %p2101_p13 = pneg %p2100_p12 }
  0x31   : > { %p2106_p11 = pnand %p2105_p5, %p2101_p13 }
  0x33   : > { %2109 = shalt.err (!%p2106_p11)
}
  0x34   : > { %s2200_s18 = smov 256   ;;  %s2201_s26 = smov 16  }
  0x35   : > { %1931 = dma.hbm_to_vmem [thread:$0]  (!%p2392_p9), %s460_s23, 512, %s462_s27, %s450_s30, %s2200_s18, %s2200_s18, %s2201_s26  }
  0x36   : > { %473 = sbr.rel (%p2357_p8) target bundleno = 1200 (0x4b0), region = 80  ;;  %s2409_s10 = sand.u32 (!%p2357_p8), 1, %s2187_s19  }
  0x37   : > { %s1874_s17 = sshll.u32 (!%p2357_p8), %s2409_s10, 5  ;;  %s476_s20 = scalar_lea.sflag (!%p2357_p8), [#allocation3], %s2409_s10 }
  0x38   : > { %s2415_s14 = scalar_lea.vmem (!%p2357_p8), [#allocation2], %s1874_s17 }
  0x3b   : > { %2170 = dma.done.wait (%p2344_p4), %s476_s20, 512  }
  0x3c   : > { %2172 = vsyncadd (%p2344_p4), %s476_s20, 4294966784 }
  0x3d   : > { %2174 = dma.done.wait (%p53_p1), [#allocation6], 256  }
  0x3e   : > { %2176 = vsyncadd (%p53_p1), [#allocation6], 4294967040  ;;  %v2202_v0 = vmov 0   ;;  %v534_v1 = vld [vmem:[%s2415_s14 + $0x10] sm:$0xff]  ;;  %v535_v2 = vld [vmem:[%s2415_s14 + $0x18] sm:$0xff]  ;;  %vm3553_vm0 = vcmask 130048   ;;  %v615_v32 = vlaneseq }
  0x3f   : > { %2009 = vset.pattern.permute.xlu0 %v2202_v0  ;;  %2010 = vset.pattern.permute.xlu2 %v2202_v0  ;;  %v532_v3 = vld [vmem:[%s2415_s14] sm:$0xff]  ;;  %v533_v4 = vld [vmem:[%s2415_s14 + $0x8] sm:$0xff]  ;;  %s2203_s15 = smov 1   ;;  %s2204_s28 = smov 127   ;;  %v2205_v19 = vmov 1   ;;  %v2206_v20 = vmov 2  }
  0x40   : > { %2014 = vset.pattern.permute.xlu1 %v2202_v0  ;;  %1912 = vmatpush.msra.mxu2 %v534_v1  ;;  %v540_v5 = vld [vmem:[%s3532_s2 + $0x8] sm:$0x3f]  ;;  %v539_v7 = vld [vmem:[%s3532_s2] sm:$0xff]  ;;  %v2207_v21 = vmov 3   ;;  %v2208_v22 = vmov 5   ;;  %s2209_s24 = smov 17  }
  0x41   : > { %1914 = vmatpush.msra.mxu3 %v535_v2  ;;  %v542_v6 = vld [vmem:[%s3533_s3 + $0x8] sm:$0x3f]  ;;  %574 = vmatpush.msra.mxu0 %v534_v1  ;;  %v541_v17 = vld [vmem:[%s3533_s3] sm:$0xff]  ;;  %s3558_s23 = smov 16   ;;  %v2496_v33 = vand.u32 127, %v615_v32  ;;  %s2211_s27 = smov 15  }
  0x42   : > { %550 = vperm.xlu0 %2009, %v542_v6   ;;  %1913 = vmatpush.msra.mxu2 %v532_v3  ;;  %v2469_v18 = vld [vmem:[%s3542_s12] sm:$0xf]  ;;  %s2212_s13 = smov 112   ;;  %vm1326_vm9 = vcmask 1041408   ;;  %vm3561_vm10 = vcmask 1043456   ;;  %vm3554_vm11 = vcmask 1045504  }
  0x43   : > { %1915 = vmatpush.msra.mxu3 %v533_v4  ;;  %1879 = vmatmul.msk.f32.vlgmr.msra.gmra.mxu2 %vm3553_vm0, %v540_v5  ;;  %v2490_v31 = vld [vmem:[%s3531_s1 + $0x1] ss:$2 sm:$0x3]  ;;  %vm717_vm3 = vcmp.lt.s32.totalorder %v2496_v33, 127  ;;  %vm687_vm6 = vcmp.lt.s32.totalorder %v2496_v33, 1  ;;  %vm1338_vm12 = vcmask 48128  }
  0x44   : > { %1881 = vmatmul.msk.f32.vlgmr.msra.gmra.mxu3 %vm3553_vm0, %v540_v5  ;;  %597 = vmatpush.msra.mxu1 %v535_v2  ;;  %vm3556_vm1 = vcmp.lt.s32.totalorder %v2490_v31, 15  ;;  %vm621_vm2 = vcmp.ge.s32.totalorder %v2490_v31, 1  ;;  %v1331_v1 = vld [vmem:[%s3538_s8] sm:$0x7]  ;;  %v2215_v6 = vmov 7   ;;  %s2216_s29 = smov 111  }
  0x45   : > { %575 = vmatpush.msra.mxu0 %v532_v3  ;;  %v720_v34 = vsel %vm3556_vm1, 1, %v2202_v0  ;;  %v690_v38 = vsel %vm621_vm2, 1, %v2202_v0  ;;  %v1332_v2 = vld [vmem:[%s3539_s9] sm:$0x7]  ;;  %vm617_vm15 = vcmp.lt.s32.totalorder %v2496_v33, 17  ;;  %s2219_s30 = smov 51  }
  0x46   : > { %1878 = vmatmul.msk.f32.vlgmr.msra.gmra.mxu0 %vm3553_vm0, %v539_v7  ;;  %598 = vmatpush.msra.mxu1 %v533_v4  ;;  %v721_v36 = vperm.slane %v720_v34, 0  ;;  %v722_v37 = vperm.slane %v720_v34, 1  ;;  %v691_v41 = vperm.slane %v690_v38, 0  ;;  %v692_v42 = vperm.slane %v690_v38, 1  ;;  %s2223_s16 = smov 125   ;;  %s2225_s18 = smov 80  }
  0x47   : > { %1880 = vmatmul.msk.f32.vlgmr.msra.gmra.mxu1 %vm3553_vm0, %v539_v7  ;;  %v2214_v4 = vmov 6   ;;  %vm641_vm0 = vcmp.lt.s32.totalorder %v2496_v33, 16 }
  0x48   : > { %vm2509_vm4 = vcmp.eq.s32.totalorder %v721_v36, 1  ;;  %vm2513_vm5 = vcmp.eq.s32.totalorder %v722_v37, 1  ;;  %vm2529_vm7 = vcmp.eq.s32.totalorder %v691_v41, 1  ;;  %vm2533_vm8 = vcmp.eq.s32.totalorder %v692_v42, 1 }
  0xb4   : > { %v551_v8 = vpop.permute.xlu0 %550 }
  0xc3   : > { %v577_v24 = vpop.f32.mrf.mxu0 }
  0xc4   : > { %v600_v25 = vpop.f32.mrf.mxu1 }
  0xc6   : > { %v580_v9 = vpop.f32.mrf.mxu2 }
  0xc7   : > { %v603_v10 = vpop.f32.mrf.mxu3  ;;  %v581_v11 = vadd.f32 %v580_v9, %v551_v8  ;;  %v830_v9 = vld [vmem:[%s3535_s5] sm:$0xf] }
  0xc8   : > { %v604_v12 = vadd.f32 %v603_v10, %v551_v8  ;;  %v2217_v8 = vmov 8   ;;  %v2594_v10 = vld [vmem:[%s3542_s12 + $0x4] sm:$0xf] }
  0xc9   : > { %v2445_v13 = vmax.f32 %v581_v11, 0.0 }
  0xca   : > { %v2447_v14 = vmax.f32 %v604_v12, 0.0 }
  0xcb   : > { %v2453_v16 = vrot.slane %v2445_v13, 4  ;;  %v1316_v52 = vrot.slane %v2445_v13, 2 }
  0xcc   : > { %v2450_v15 = vrot.slane %v2447_v14, 4  ;;  %v1317_v53 = vrot.slane %v2447_v14, 2  ;;  %v2021_v7 = vpack.i.bf16 %v2447_v14, %v2445_v13 }
  0xcd   : > { %1308 = vrot.lane.b32.xlu0 %v2453_v16, %s2204_s28 }
  0xce   : > { %1302 = vrot.lane.b32.xlu2 %v2450_v15, %s2203_s15  ;;  %1310 = vrot.lane.b32.xlu1 %v2450_v15, %s2204_s28 }
  0xd6   : > { %545 = vperm.xlu2 %2010, %v541_v17   ;;  %1300 = vrot.lane.b32.xlu1 %v2453_v16, %s2203_s15 }
  0xde   : > { %632 = vperm.xlu2 %2010, %v2469_v18  }
  0xe6   : > { %2011 = vset.pattern.permute.xlu2 %v2205_v19 }
  0xe7   : > { %652 = vperm.xlu2 %2011, %v2469_v18  }
  0xef   : > { %2012 = vset.pattern.permute.xlu2 %v2206_v20 }
  0xf0   : > { %676 = vperm.xlu2 %2012, %v2469_v18  }
  0xf8   : > { %2013 = vset.pattern.permute.xlu2 %v2207_v21 }
  0xf9   : > { %698 = vperm.xlu2 %2013, %v2469_v18  }
 0x101   : > { %2015 = vset.pattern.permute.xlu2 %v2208_v22 }
 0x128   : > { %v1303_v23 = vpop.permute.xlu2 %1302 }
 0x130   : > { %v546_v26 = vpop.permute.xlu2 %545 }
 0x131   : > { %v578_v27 = vadd.f32 %v577_v24, %v546_v26  ;;  %v601_v28 = vadd.f32 %v600_v25, %v546_v26 }
 0x133   : > { %v2479_v29 = vmax.f32 %v578_v27, 0.0  ;;  %v2481_v30 = vmax.f32 %v601_v28, 0.0 }
 0x135   : > { %613 = vrot.lane.b32.xlu1 %v2481_v30, %s2209_s24  ;;  %713 = vrot.lane.b32.xlu2 %v2479_v29, %s2204_s28  ;;  %v806_v40 = vrot.slane %v2479_v29, 4  ;;  %v807_v3 = vrot.slane %v2481_v30, 4 }
 0x136   : > { %611 = vrot.lane.b32.xlu0 %v2479_v29, %s2209_s24  ;;  %s2213_s24 = smov 113  }
 0x137   : > { %v2016_v5 = vpack.i.bf16 %v807_v3, %v806_v40 }
 0x138   : > { %v633_v11 = vpop.permute.xlu2 %632 }
 0x13d   : > { %639 = vrot.lane.b32.xlu1 %v2481_v30, %s3558_s23  ;;  %728 = vperm.xlu2 %2015, %v2469_v18  }
 0x13e   : > { %637 = vrot.lane.b32.xlu0 %v2479_v29, %s3558_s23 }
 0x13f   : > { %v1309_v39 = vpop.permute.xlu0 %1308 }
 0x140   : > { %v1311_v35 = vpop.permute.xlu1 %1310 }
 0x141   : > { %v1312_v45 = vsel %vm717_vm3, %v1309_v39, %v1311_v35  ;;  %v1313_v46 = vsel %vm717_vm3, %v1311_v35, %v1309_v39  ;;  %v653_v12 = vpop.permute.xlu2 %652 }
 0x142   : > { %v1314_v47 = vsel %vm2509_vm4, %v1312_v45, 0.0  ;;  %v1315_v48 = vsel %vm2513_vm5, %v1313_v46, 0.0 }
 0x143   : > { %v1322_v56 = vrot.slane %v1314_v47, 4  ;;  %v1323_v57 = vrot.slane %v1315_v48, 4 }
 0x145   : > { %661 = vrot.lane.b32.xlu1 %v2481_v30, %s2211_s27  ;;  %818 = vrot.lane.b32.xlu2 %v806_v40, %s2212_s13 }
 0x146   : > { %659 = vrot.lane.b32.xlu0 %v2479_v29, %s2211_s27  ;;  %2026 = vset.pattern.permute.xlu2 %v2214_v4  ;;  %s2222_s27 = smov 3  }
 0x148   : > { %v1301_v51 = vpop.permute.xlu1 %1300 }
 0x149   : > { %v1304_v54 = vsel %vm687_vm6, %v1301_v51, %v1303_v23  ;;  %v1305_v55 = vsel %vm687_vm6, %v1303_v23, %v1301_v51 }
 0x14a   : > { %v1306_v58 = vsel %vm2529_vm7, %v1305_v55, 0.0  ;;  %v1307_v59 = vsel %vm2533_vm8, %v1304_v54, 0.0 }
 0x14b   : > { %v1327_v60 = vsel %vm1326_vm9, %v1306_v58, %v1316_v52  ;;  %v1328_v61 = vsel %vm1326_vm9, %v1307_v59, %v1317_v53 }
 0x14c   : > { %v1329_v62 = vsel %vm3561_vm10, %v1327_v60, %v1322_v56  ;;  %v1330_v63 = vsel %vm3561_vm10, %v1328_v61, %v1323_v57 }
 0x14d   : > { %685 = vrot.lane.b32.xlu1 %v2481_v30, %s2203_s15  ;;  %1892 = vmatpush.msk.msrb.mxu0 %vm3554_vm11, %v1329_v62 }
 0x14e   : > { %1894 = vmatpush.msk.msrb.mxu1 %vm3554_vm11, %v1330_v63  ;;  %683 = vrot.lane.b32.xlu0 %v2479_v29, %s2203_s15 }
 0x14f   : > { %1089 = vrot.lane.b32.xlu2 %v2445_v13, %s2204_s28  ;;  %1893 = vmatmul.msk.f32.vlgmr.msrb.gmra.mxu0 %vm1338_vm12, %v1331_v1  ;;  %v2601_v13 = vld [vmem:[%s3531_s1] ss:$2 sm:$0x3] }
 0x150   : > { %1895 = vmatmul.msk.f32.vlgmr.msrb.gmra.mxu1 %vm1338_vm12, %v1331_v1  ;;  %vm620_vm13 = vcmp.ge.s32.totalorder %v2601_v13, 1 }
 0x151   : > { %vm622_vm14 = vmand %vm620_vm13, %vm621_vm2  ;;  %v644_v34 = vsel %vm620_vm13, 1, %v2202_v0 }
 0x152   : > { %v623_v17 = vsel %vm622_vm14, 1, %v2202_v0  ;;  %v645_v39 = vperm.slane %v644_v34, 0  ;;  %v646_v40 = vperm.slane %v644_v34, 1  ;;  %vm667_vm14 = vmand %vm620_vm13, %vm3556_vm1  ;;  %vm663_vm13 = vcmp.lt.s32.totalorder %v2496_v33, 15 }
 0x153   : > { %v624_v23 = vperm.slane %v623_v17, 0  ;;  %v625_v24 = vperm.slane %v623_v17, 1  ;;  %v668_v46 = vsel %vm667_vm14, 1, %v2202_v0  ;;  %vm3555_vm14 = vcmp.lt.s32.totalorder %v2601_v13, 15 }
 0x154   : > { %vm2630_vm11 = vcmp.eq.s32.totalorder %v645_v39, 1  ;;  %v669_v55 = vperm.slane %v668_v46, 0  ;;  %v670_v56 = vperm.slane %v668_v46, 1 }
 0x155   : > { %1335 = vperm.xlu1 %2014, %v1332_v2   ;;  %vm2610_vm9 = vcmp.eq.s32.totalorder %v624_v23, 1  ;;  %vm2614_vm12 = vcmp.eq.s32.totalorder %v625_v24, 1 }
 0x156   : > { %735 = vrot.lane.b32.xlu0 %v2479_v29, %s2213_s24 }
 0x157   : > { %752 = vperm.xlu2 %2026, %v2469_v18  }
 0x15d   : > { %715 = vrot.lane.b32.xlu1 %v2481_v30, %s2204_s28 }
 0x15e   : > { %820 = vrot.lane.b32.xlu0 %v807_v3, %s2212_s13 }
 0x15f   : > { %2027 = vset.pattern.permute.xlu2 %v2215_v6 }
 0x160   : > { %774 = vperm.xlu2 %2027, %v2469_v18  }
 0x165   : > { %737 = vrot.lane.b32.xlu1 %v2481_v30, %s2213_s24  ;;  %s2226_s24 = smov 77  }
 0x166   : > { %1091 = vrot.lane.b32.xlu0 %v2447_v14, %s2204_s28  ;;  %v677_v14 = vpop.permute.xlu2 %676  ;;  %s2218_s28 = smov 48  }
 0x168   : > { %2028 = vset.pattern.permute.xlu2 %v2217_v8 }
 0x169   : > { %797 = vperm.xlu2 %2028, %v2469_v18  }
 0x16d   : > { %2017 = vrot.lane.b32.xlu1 %v2016_v5, %s3558_s23 }
 0x16e   : > { %759 = vrot.lane.b32.xlu0 %v2479_v29, %s2212_s13  ;;  %v699_v25 = vpop.permute.xlu2 %698 }
 0x175   : > { %2022 = vrot.lane.b32.xlu1 %v2021_v7, %s2203_s15  ;;  %s2221_s15 = smov 45  }
 0x176   : > { %781 = vrot.lane.b32.xlu0 %v2479_v29, %s2216_s29 }
 0x17d   : > { %761 = vrot.lane.b32.xlu1 %v2481_v30, %s2212_s13 }
 0x17e   : > { %833 = vperm.xlu0 %2009, %v830_v9  }
 0x185   : > { %783 = vrot.lane.b32.xlu1 %v2481_v30, %s2216_s29 }
 0x186   : > { %2045 = vset.pattern.permute.xlu0 %v2205_v19 }
 0x18d   : > { %909 = vperm.xlu1 %2014, %v2594_v10  }
 0x18f   : > { %v714_v48 = vpop.permute.xlu2 %713 }
 0x195   : > { %2034 = vset.pattern.permute.xlu1 %v2205_v19 }
 0x197   : > { %v729_v9 = vpop.permute.xlu2 %728 }
 0x1a7   : > { %v614_v26 = vpop.permute.xlu1 %613 }
 0x1a8   : > { %v612_v32 = vpop.permute.xlu0 %611 }
 0x1a9   : > { %v618_v35 = vsel %vm617_vm15, %v612_v32, %v614_v26  ;;  %v619_v36 = vsel %vm617_vm15, %v614_v26, %v612_v32  ;;  %vm2634_vm15 = vcmp.eq.s32.totalorder %v646_v40, 1 }
 0x1aa   : > { %v628_v37 = vsel %vm2610_vm9, %v619_v36, 0.0  ;;  %v629_v38 = vsel %vm2614_vm12, %v618_v35, 0.0  ;;  %vm671_vm9 = vcmp.eq.s32.totalorder %v669_v55, 1  ;;  %vm672_vm12 = vcmp.eq.s32.totalorder %v670_v56, 1 }
 0x1ab   : > { %v635_v57 = vmul.f32 %v633_v11, %v628_v37  ;;  %v636_v58 = vmul.f32 %v633_v11, %v629_v38  ;;  %v819_v37 = vpop.permute.xlu2 %818 }
 0x1af   : > { %v640_v41 = vpop.permute.xlu1 %639 }
 0x1b0   : > { %v638_v47 = vpop.permute.xlu0 %637 }
 0x1b1   : > { %v642_v51 = vsel %vm641_vm0, %v638_v47, %v640_v41  ;;  %v643_v52 = vsel %vm641_vm0, %v640_v41, %v638_v47  ;;  %v766_v41 = vsel %vm3555_vm14, 1, %v2202_v0 }
 0x1b2   : > { %v649_v53 = vsel %vm2630_vm11, %v643_v52, 0.0  ;;  %v650_v54 = vsel %vm2634_vm15, %v642_v51, 0.0  ;;  %v768_v46 = vperm.slane %v766_v41, 1 }
 0x1b3   : > { %v655_v59 = vmul.f32 %v653_v12, %v649_v53  ;;  %v656_v60 = vmul.f32 %v653_v12, %v650_v54  ;;  %v1090_v51 = vpop.permute.xlu2 %1089 }
 0x1b5   : > { %v657_v61 = vadd.f32 %v655_v59, %v635_v57  ;;  %v658_v62 = vadd.f32 %v656_v60, %v636_v58 }
 0x1b7   : > { %v662_v63 = vpop.permute.xlu1 %661 }
 0x1b8   : > { %v660_v1 = vpop.permute.xlu0 %659 }
 0x1b9   : > { %v664_v2 = vsel %vm663_vm13, %v660_v1, %v662_v63  ;;  %v665_v3 = vsel %vm663_vm13, %v662_v63, %v660_v1  ;;  %vm743_vm13 = vmand %vm3555_vm14, %vm621_vm2  ;;  %vm2680_vm2 = vcmp.eq.s32.totalorder %v768_v46, 1 }
 0x1ba   : > { %v673_v5 = vsel %vm671_vm9, %v665_v3, 0.0  ;;  %v674_v7 = vsel %vm672_vm12, %v664_v2, 0.0  ;;  %vm3557_vm9 = vcmp.lt.s32.totalorder %v2496_v33, 112  ;;  %v744_v47 = vsel %vm743_vm13, 1, %v2202_v0 }
 0x1bb   : > { %v679_v17 = vmul.f32 %v677_v14, %v673_v5  ;;  %v680_v23 = vmul.f32 %v677_v14, %v674_v7  ;;  %v746_v1 = vperm.slane %v744_v47, 1  ;;  %vm739_vm13 = vcmp.lt.s32.totalorder %v2496_v33, 113  ;;  %v753_v7 = vpop.permute.xlu2 %752 }
 0x1bd   : > { %v681_v24 = vadd.f32 %v679_v17, %v657_v61  ;;  %v682_v26 = vadd.f32 %v680_v23, %v658_v62  ;;  %v745_v61 = vperm.slane %v744_v47, 0  ;;  %vm748_vm1 = vcmp.eq.s32.totalorder %v746_v1, 1 }
 0x1bf   : > { %v686_v11 = vpop.permute.xlu1 %685  ;;  %vm747_vm14 = vcmp.eq.s32.totalorder %v745_v61, 1 }
 0x1c0   : > { %v684_v27 = vpop.permute.xlu0 %683 }
 0x1c1   : > { %v688_v12 = vsel %vm687_vm6, %v684_v27, %v686_v11  ;;  %v689_v28 = vsel %vm687_vm6, %v686_v11, %v684_v27 }
 0x1c2   : > { %v695_v32 = vsel %vm2529_vm7, %v689_v28, 0.0  ;;  %v696_v34 = vsel %vm2533_vm8, %v688_v12, 0.0 }
 0x1c3   : > { %v701_v35 = vmul.f32 %v699_v25, %v695_v32  ;;  %v702_v36 = vmul.f32 %v699_v25, %v696_v34  ;;  %v767_v25 = vperm.slane %v766_v41, 0  ;;  %v775_v49 = vpop.permute.xlu2 %774 }
 0x1c5   : > { %v2656_v14 = vadd.f32 %v701_v35, %v681_v24  ;;  %v2658_v38 = vadd.f32 %v702_v36, %v682_v26  ;;  %vm2676_vm12 = vcmp.eq.s32.totalorder %v767_v25, 1  ;;  %v829_v25 = vld [vmem:[%s3534_s4] sm:$0xf] }
 0x1c7   : > { %v2661_v39 = vpop.permute.xlu1 %1335 }
 0x1c8   : > { %v736_v40 = vpop.permute.xlu0 %735 }
 0x1cf   : > { %v716_v52 = vpop.permute.xlu1 %715 }
 0x1d0   : > { %v718_v53 = vsel %vm717_vm3, %v714_v48, %v716_v52  ;;  %v719_v54 = vsel %vm717_vm3, %v716_v52, %v714_v48  ;;  %v821_v55 = vpop.permute.xlu0 %820 }
 0x1d1   : > { %v725_v58 = vsel %vm2509_vm4, %v718_v53, 0.0  ;;  %v726_v59 = vsel %vm2513_vm5, %v719_v54, 0.0  ;;  %v822_v60 = vsel %vm3557_vm9, %v819_v37, %v821_v55  ;;  %v823_v63 = vsel %vm3557_vm9, %v821_v55, %v819_v37 }
 0x1d2   : > { %v2690_v48 = vmul.f32 %v729_v9, %v725_v58  ;;  %v2692_v62 = vmul.f32 %v729_v9, %v726_v59  ;;  %v824_v2 = vsel %vm2676_vm12, %v822_v60, 0.0  ;;  %v825_v3 = vsel %vm2680_vm2, %v823_v63, 0.0 }
 0x1d3   : > { %1882 = vmatpush.msk.msrb.mxu2 %vm3561_vm10, %v824_v2  ;;  %1884 = vmatpush.msk.msrb.mxu3 %vm3561_vm10, %v825_v3  ;;  %vm836_vm9 = vcmask 97280  }
 0x1d7   : > { %v738_v5 = vpop.permute.xlu1 %737 }
 0x1d8   : > { %v740_v9 = vsel %vm739_vm13, %v736_v40, %v738_v5  ;;  %v741_v17 = vsel %vm739_vm13, %v738_v5, %v736_v40  ;;  %v1092_v12 = vpop.permute.xlu0 %1091  ;;  %vm898_vm13 = vcmp.ge.s32.totalorder %v2490_v31, 3 }
 0x1d9   : > { %v749_v23 = vsel %vm747_vm14, %v740_v9, 0.0  ;;  %v750_v24 = vsel %vm748_vm1, %v741_v17, 0.0  ;;  %v1093_v36 = vsel %vm717_vm3, %v1090_v51, %v1092_v12  ;;  %v1094_v37 = vsel %vm717_vm3, %v1092_v12, %v1090_v51 }
 0x1da   : > { %v2703_v26 = vmul.f32 %v753_v7, %v749_v23  ;;  %v2705_v11 = vmul.f32 %v753_v7, %v750_v24  ;;  %v1095_v51 = vsel %vm2509_vm4, %v1093_v36, 0.0  ;;  %v1096_v52 = vsel %vm2513_vm5, %v1094_v37, 0.0  ;;  %v1105_v37 = vld [vmem:[%s3536_s6] sm:$0xf] }
 0x1db   : > { %vm3610_vm1 = vcmp.lt.s32.totalorder %v2490_v31, 15  ;;  %vm3611_vm3 = vcmp.lt.s32.totalorder %v2601_v13, 15  ;;  %vm3612_vm5 = vcmp.lt.s32.totalorder %v2496_v33, 112 }
 0x1dc   : > { %vm788_vm4 = vmand %vm3611_vm3, %vm3610_vm1  ;;  %vm3559_vm3 = vcmp.lt.s32.totalorder %v2496_v33, 48 }
 0x1dd   : > { %v789_v2 = vsel %vm788_vm4, 1, %v2202_v0  ;;  %vm3560_vm4 = vcmp.lt.s32.totalorder %v2496_v33, 51 }
 0x1de   : > { %v790_v9 = vperm.slane %v789_v2, 0  ;;  %v791_v17 = vperm.slane %v789_v2, 1 }
 0x1df   : > { %v2018_v27 = vpop.permute.xlu1 %2017 }
 0x1e0   : > { %v2020_v28 = vunpack.i.h.bf16 %v2018_v27  ;;  %v2019_v32 = vunpack.i.l.bf16 %v2018_v27  ;;  %v760_v63 = vpop.permute.xlu0 %759  ;;  %vm2768_vm14 = vcmp.eq.s32.totalorder %v791_v17, 1 }
 0x1e2   : > { %v815_v34 = vsel %vm641_vm0, %v2020_v28, %v2019_v32  ;;  %v814_v35 = vsel %vm641_vm0, %v2019_v32, %v2020_v28 }
 0x1e3   : > { %v816_v40 = vsel %vm2630_vm11, %v815_v34, 0.0  ;;  %v817_v41 = vsel %vm2634_vm15, %v814_v35, 0.0 }
 0x1e4   : > { %v827_v46 = vsel %vm3561_vm10, %v816_v40, %v2479_v29  ;;  %v828_v47 = vsel %vm3561_vm10, %v817_v41, %v2481_v30 }
 0x1e5   : > { %861 = vmatpush.msrb.mxu2 %v827_v46  ;;  %881 = vmatpush.msrb.mxu3 %v828_v47  ;;  %v1386_v46 = vpop.f32.mrf.mxu1 }
 0x1e6   : > { %1883 = vmatmul.msk.f32.vlgmr.msrb.gmra.mxu2 %vm836_vm9, %v829_v25  ;;  %1885 = vmatmul.msk.f32.vlgmr.msrb.gmra.mxu3 %vm836_vm9, %v829_v25  ;;  %v1366_v25 = vpop.f32.mrf.mxu0 }
 0x1e7   : > { %1887 = vmatpush.msk.msra.mxu2 %vm3561_vm10, %v1095_v51  ;;  %1889 = vmatpush.msk.msra.mxu3 %vm3561_vm10, %v1096_v52  ;;  %v2023_v53 = vpop.permute.xlu1 %2022 }
 0x1e8   : > { %v2025_v54 = vunpack.i.h.bf16 %v2023_v53  ;;  %v2024_v55 = vunpack.i.l.bf16 %v2023_v53  ;;  %v782_v27 = vpop.permute.xlu0 %781 }
 0x1ea   : > { %v1086_v58 = vsel %vm687_vm6, %v2025_v54, %v2024_v55  ;;  %v1085_v43 = vsel %vm687_vm6, %v2024_v55, %v2025_v54  ;;  %vm3613_vm6 = vmmov %vm3612_vm5  ;;  %v1367_v54 = vadd.f32 %v1366_v25, %v2661_v39  ;;  %v1387_v55 = vadd.f32 %v1386_v46, %v2661_v39 }
 0x1eb   : > { %v1087_v44 = vsel %vm2529_vm7, %v1086_v58, 0.0  ;;  %v1088_v59 = vsel %vm2533_vm8, %v1085_v43, 0.0  ;;  %vm785_vm7 = vcmp.lt.s32.totalorder %v2496_v33, 111  ;;  %vm2764_vm8 = vcmp.eq.s32.totalorder %v790_v9, 1 }
 0x1ec   : > { %v1103_v60 = vsel %vm3561_vm10, %v1087_v44, %v2453_v16  ;;  %v1104_v61 = vsel %vm3561_vm10, %v1088_v59, %v2450_v15  ;;  %v2799_v58 = vmax.f32 %v1367_v54, 0.0  ;;  %v2801_v43 = vmax.f32 %v1387_v55, 0.0  ;;  %v1425_v59 = vld [vmem:[%s3541_s11] sm:$0xf] }
 0x1ed   : > { %1136 = vmatpush.msra.mxu2 %v1103_v60  ;;  %1156 = vmatpush.msra.mxu3 %v1104_v61  ;;  %v2220_v44 = vmov 4   ;;  %v1106_v60 = vld [vmem:[%s3537_s7] sm:$0xf]  ;;  %v2858_v61 = vld [vmem:[%s3542_s12 + $0xc] sm:$0xf]  ;;  %vm1419_vm10 = vcmask 1042432  }
 0x1ee   : > { %1888 = vmatmul.msk.f32.vlgmr.msra.gmra.mxu2 %vm836_vm9, %v1105_v37  ;;  %1890 = vmatmul.msk.f32.vlgmr.msra.gmra.mxu3 %vm836_vm9, %v1105_v37  ;;  %v2029_v39 = vpack.i.bf16 %v2801_v43, %v2799_v58  ;;  %vm897_vm9 = vcmp.ge.s32.totalorder %v2601_v13, 3 }
 0x1ef   : > { %v762_v1 = vpop.permute.xlu1 %761  ;;  %2037 = vset.pattern.permute.xlu2 %v2220_v44  ;;  %vm899_vm1 = vmand %vm897_vm9, %vm898_vm13 }
 0x1f0   : > { %v764_v50 = vsel %vm3612_vm5, %v760_v63, %v762_v1  ;;  %v765_v16 = vsel %vm3613_vm6, %v762_v1, %v760_v63  ;;  %v834_v36 = vpop.permute.xlu0 %833  ;;  %v2867_v63 = vpop.permute.xlu2 %797  ;;  %v2872_v1 = vld [vmem:[%s3542_s12 + $0x8] sm:$0xf]  ;;  %v900_v2 = vsel %vm899_vm1, 1, %v2202_v0 }
 0x1f1   : > { %v771_v15 = vsel %vm2676_vm12, %v764_v50, 0.0  ;;  %v772_v3 = vsel %vm2680_vm2, %v765_v16, 0.0  ;;  %v901_v50 = vperm.slane %v900_v2, 0  ;;  %v902_v16 = vperm.slane %v900_v2, 1 }
 0x1f2   : > { %v2759_v5 = vmul.f32 %v775_v49, %v771_v15  ;;  %v2761_v7 = vmul.f32 %v775_v49, %v772_v3 }
 0x1f3   : > { %vm2896_vm5 = vcmp.eq.s32.totalorder %v901_v50, 1  ;;  %vm2900_vm6 = vcmp.eq.s32.totalorder %v902_v16, 1 }
 0x1f7   : > { %v784_v12 = vpop.permute.xlu1 %783 }
 0x1f8   : > { %v2772_v28 = vsel %vm785_vm7, %v782_v27, %v784_v12  ;;  %v2774_v32 = vsel %vm785_vm7, %v784_v12, %v782_v27  ;;  %vm3622_vm7 = vcmp.lt.s32.totalorder %v2496_v33, 112 }
 0x1f9   : > { %v794_v34 = vsel %vm2764_vm8, %v2772_v28, 0.0  ;;  %v795_v35 = vsel %vm2768_vm14, %v2774_v32, 0.0  ;;  %vm3623_vm1 = vmmov %vm3622_vm7  ;;  %vm3659_vm14 = vcmp.lt.s32.totalorder %v2496_v33, 51 }
 0x1ff   : > { %v910_v49 = vpop.permute.xlu1 %909 }
 0x269   : > { %v863_v40 = vpop.f32.mrf.mxu2  ;;  %v883_v41 = vpop.f32.mrf.mxu3 }
 0x26a   : > { %v864_v47 = vadd.f32 %v863_v40, %v834_v36  ;;  %v884_v51 = vadd.f32 %v883_v41, %v834_v36 }
 0x26c   : > { %v2787_v52 = vmax.f32 %v864_v47, 0.0  ;;  %v2789_v53 = vmax.f32 %v884_v51, 0.0  ;;  %v921_v47 = vsel %vm897_vm9, 1, %v2202_v0 }
 0x26d   : > { %v922_v55 = vperm.slane %v921_v47, 0 }
 0x26e   : > { %916 = vrot.lane.b32.xlu0 %v2789_v53, %s2218_s28  ;;  %892 = vrot.lane.b32.xlu2 %v2789_v53, %s2219_s30 }
 0x26f   : > { %890 = vrot.lane.b32.xlu1 %v2787_v52, %s2219_s30 }
 0x276   : > { %1401 = vrot.lane.b32.xlu0 %v2801_v43, %s2212_s13  ;;  %914 = vrot.lane.b32.xlu2 %v2787_v52, %s2218_s28 }
 0x277   : > { %2030 = vrot.lane.b32.xlu1 %v2029_v39, %s3558_s23  ;;  %v923_v39 = vperm.slane %v921_v47, 1  ;;  %s3628_s23 = sld [smem:[#allocation17_spill]] }
 0x27d   : > { %v1424_v42 = vld [vmem:[%s3628_s23] sm:$0xf] }
 0x27e   : > { %938 = vrot.lane.b32.xlu0 %v2789_v53, %s2221_s15  ;;  %1399 = vrot.lane.b32.xlu2 %v2799_v58, %s2212_s13  ;;  %s2224_s13 = smov 83  }
 0x27f   : > { %929 = vperm.xlu1 %2034, %v2594_v10  }
 0x286   : > { %962 = vrot.lane.b32.xlu0 %v2789_v53, %s2222_s27  ;;  %936 = vrot.lane.b32.xlu2 %v2787_v52, %s2221_s15 }
 0x287   : > { %2035 = vset.pattern.permute.xlu1 %v2206_v20 }
 0x288   : > { %953 = vperm.xlu1 %2035, %v2594_v10  }
 0x28e   : > { %990 = vrot.lane.b32.xlu0 %v2787_v52, %s2223_s16  ;;  %960 = vrot.lane.b32.xlu2 %v2787_v52, %s2222_s27 }
 0x290   : > { %2036 = vset.pattern.permute.xlu1 %v2207_v21 }
 0x291   : > { %975 = vperm.xlu1 %2036, %v2594_v10  }
 0x296   : > { %1012 = vrot.lane.b32.xlu0 %v2787_v52, %s2224_s13  ;;  %983 = vperm.xlu2 %2037, %v2594_v10  }
 0x299   : > { %992 = vrot.lane.b32.xlu1 %v2789_v53, %s2223_s16 }
 0x29a   : > { %2040 = vset.pattern.permute.xlu1 %v2202_v0 }
 0x29e   : > { %1036 = vrot.lane.b32.xlu0 %v2787_v52, %s2225_s18  ;;  %2038 = vset.pattern.permute.xlu2 %v2208_v22 }
 0x29f   : > { %1005 = vperm.xlu2 %2038, %v2594_v10  }
 0x2a1   : > { %1014 = vrot.lane.b32.xlu1 %v2789_v53, %s2224_s13 }
 0x2a6   : > { %1038 = vrot.lane.b32.xlu0 %v2789_v53, %s2225_s18 }
 0x2a7   : > { %2039 = vset.pattern.permute.xlu2 %v2214_v4 }
 0x2a8   : > { %1029 = vperm.xlu2 %2039, %v2594_v10  }
 0x2a9   : > { %1428 = vperm.xlu1 %2040, %v1425_v59  }
 0x2ae   : > { %1060 = vrot.lane.b32.xlu0 %v2789_v53, %s2226_s24 }
 0x2b0   : > { %2041 = vset.pattern.permute.xlu2 %v2202_v0 }
 0x2b1   : > { %2042 = vset.pattern.permute.xlu1 %v2215_v6  ;;  %1109 = vperm.xlu2 %2041, %v1106_v60  }
 0x2b2   : > { %1051 = vperm.xlu1 %2042, %v2594_v10  }
 0x2b6   : > { %1522 = vperm.xlu0 %2045, %v2858_v61  }
 0x2b9   : > { %1058 = vrot.lane.b32.xlu2 %v2787_v52, %s2226_s24 }
 0x2ba   : > { %2043 = vset.pattern.permute.xlu1 %v2217_v8 }
 0x2bb   : > { %1074 = vperm.xlu1 %2043, %v2594_v10  }
 0x2be   : > { %2046 = vset.pattern.permute.xlu0 %v2220_v44 }
 0x2bf   : > { %706 = vperm.xlu0 %2046, %v2469_v18  }
 0x2c1   : > { %1503 = vperm.xlu2 %2041, %v2858_v61  }
 0x2c3   : > { %2044 = vset.pattern.permute.xlu1 %v2202_v0 }
 0x2c4   : > { %1175 = vperm.xlu1 %2044, %v2872_v1  }
 0x2c7   : > { %1576 = vperm.xlu0 %2046, %v2858_v61  }
 0x2c8   : > { %v893_v10 = vpop.permute.xlu2 %892 }
 0x2c9   : > { %2050 = vset.pattern.permute.xlu2 %v2207_v21 }
 0x2ca   : > { %1221 = vperm.xlu2 %2050, %v2872_v1  }
 0x2cc   : > { %2047 = vset.pattern.permute.xlu1 %v2205_v19 }
 0x2cd   : > { %1189 = vperm.xlu1 %2047, %v2872_v1  }
 0x2cf   : > { %2057 = vset.pattern.permute.xlu0 %v2202_v0 }
 0x2d0   : > { %v915_v18 = vpop.permute.xlu2 %914 }
 0x2d2   : > { %2056 = vset.pattern.permute.xlu2 %v2217_v8 }
 0x2d5   : > { %2048 = vset.pattern.permute.xlu1 %v2206_v20 }
 0x2d6   : > { %1546 = vperm.xlu1 %2048, %v2858_v61  }
 0x2d8   : > { %v1400_v19 = vpop.permute.xlu2 %1399 }
 0x2de   : > { %1205 = vperm.xlu1 %2048, %v2872_v1  }
 0x2e0   : > { %v917_v20 = vpop.permute.xlu0 %916  ;;  %v937_v9 = vpop.permute.xlu2 %936 }
 0x2e1   : > { %v919_v17 = vsel %vm3559_vm3, %v915_v18, %v917_v20  ;;  %v920_v27 = vsel %vm3559_vm3, %v917_v20, %v915_v18  ;;  %v891_v12 = vpop.permute.xlu1 %890  ;;  %vm1435_vm3 = vcmask 1040384   ;;  %v1409_v20 = vrot.slane %v2799_v58, 5 }
 0x2e2   : > { %v895_v36 = vsel %vm3560_vm4, %v891_v12, %v893_v10  ;;  %v896_v37 = vsel %vm3560_vm4, %v893_v10, %v891_v12  ;;  %vm3564_vm4 = vcmp.lt.s32.totalorder %v2490_v31, 13  ;;  %v1410_v12 = vrot.slane %v2801_v43, 5 }
 0x2e3   : > { %v905_v40 = vsel %vm2896_vm5, %v896_v37, 0.0  ;;  %v906_v41 = vsel %vm2900_vm6, %v895_v36, 0.0 }
 0x2e4   : > { %v912_v25 = vmul.f32 %v910_v49, %v905_v40  ;;  %v913_v46 = vmul.f32 %v910_v49, %v906_v41 }
 0x2e6   : > { %2049 = vset.pattern.permute.xlu1 %v2207_v21 }
 0x2e7   : > { %1568 = vperm.xlu1 %2049, %v2858_v61  }
 0x2e8   : > { %v1402_v51 = vpop.permute.xlu0 %1401  ;;  %v961_v54 = vpop.permute.xlu2 %960 }
 0x2e9   : > { %v1403_v59 = vsel %vm3622_vm7, %v1400_v19, %v1402_v51  ;;  %v1404_v60 = vsel %vm3623_vm1, %v1402_v51, %v1400_v19  ;;  %v2031_v10 = vpop.permute.xlu1 %2030 }
 0x2ea   : > { %v1405_v18 = vsel %vm2676_vm12, %v1403_v59, 0.0  ;;  %v1406_v21 = vsel %vm2680_vm2, %v1404_v60, 0.0  ;;  %v2033_v49 = vunpack.i.h.bf16 %v2031_v10  ;;  %v2032_v2 = vunpack.i.l.bf16 %v2031_v10 }
 0x2eb   : > { %v1415_v50 = vrot.slane %v1405_v18, 2  ;;  %v1416_v16 = vrot.slane %v1406_v21, 2  ;;  %vm2940_vm12 = vcmp.eq.s32.totalorder %v922_v55, 1  ;;  %vm2944_vm2 = vcmp.eq.s32.totalorder %v923_v39, 1 }
 0x2ec   : > { %v1395_v19 = vsel %vm641_vm0, %v2032_v2, %v2033_v49  ;;  %v1396_v36 = vsel %vm641_vm0, %v2033_v49, %v2032_v2  ;;  %vm944_vm0 = vmand %vm897_vm9, %vm3564_vm4  ;;  %v927_v60 = vsel %vm2944_vm2, %v919_v17, 0.0 }
 0x2ed   : > { %1896 = vmatpush.msk.msrb.mxu2 %vm1435_vm3, %v1415_v50  ;;  %1898 = vmatpush.msk.msrb.mxu3 %vm1435_vm3, %v1416_v16  ;;  %v1397_v56 = vsel %vm2630_vm11, %v1396_v36, 0.0  ;;  %v1398_v57 = vsel %vm2634_vm15, %v1395_v19, 0.0  ;;  %vm3563_vm11 = vcmp.lt.s32.totalorder %v2496_v33, 45  ;;  %vm1431_vm15 = vcmask 72704  }
 0x2ee   : > { %v1420_v43 = vsel %vm1419_vm10, %v1397_v56, %v1409_v20  ;;  %v1421_v40 = vsel %vm1419_vm10, %v1398_v57, %v1410_v12  ;;  %vm3629_vm3 = vcmask 1045504   ;;  %v945_v51 = vsel %vm944_vm0, 1, %v2202_v0 }
 0x2ef   : > { %2051 = vset.pattern.permute.xlu1 %v2220_v44  ;;  %v1422_v45 = vsel %vm3629_vm3, %v1420_v43, %v1415_v50  ;;  %vm3630_vm7 = vmmov %vm3629_vm3  ;;  %v926_v44 = vsel %vm2940_vm12, %v920_v27, 0.0  ;;  %v946_v49 = vperm.slane %v945_v51, 0  ;;  %v947_v2 = vperm.slane %v945_v51, 1 }
 0x2f0   : > { %v1423_v41 = vsel %vm3630_vm7, %v1421_v40, %v1416_v16  ;;  %1229 = vperm.xlu1 %2051, %v2872_v1   ;;  %1455 = vmatpush.msrb.mxu2 %v1422_v45  ;;  %v939_v47 = vpop.permute.xlu0 %938  ;;  %v984_v10 = vpop.permute.xlu2 %983  ;;  %vm3562_vm10 = vcmp.lt.s32.totalorder %v2496_v33, 3  ;;  %v967_v12 = vsel %vm898_vm13, 1, %v2202_v0  ;;  %vm3566_vm3 = vcmp.lt.s32.totalorder %v2601_v13, 13 }
 0x2f1   : > { %1475 = vmatpush.msrb.mxu3 %v1423_v41  ;;  %v941_v55 = vsel %vm3563_vm11, %v937_v9, %v939_v47  ;;  %v942_v39 = vsel %vm3563_vm11, %v939_v47, %v937_v9  ;;  %v930_v59 = vpop.permute.xlu1 %929  ;;  %1897 = vmatmul.msk.f32.vlgmr.msrb.gmra.mxu2 %vm1431_vm15, %v1424_v42  ;;  %vm2972_vm9 = vcmp.eq.s32.totalorder %v946_v49, 1  ;;  %vm2976_vm1 = vcmp.eq.s32.totalorder %v947_v2, 1  ;;  %vm1020_vm7 = vmand %vm3566_vm3, %vm898_vm13 }
 0x2f2   : > { %v932_v18 = vmul.f32 %v930_v59, %v926_v44  ;;  %v933_v21 = vmul.f32 %v930_v59, %v927_v60  ;;  %1899 = vmatmul.msk.f32.vlgmr.msrb.gmra.mxu3 %vm1431_vm15, %v1424_v42  ;;  %v950_v36 = vsel %vm2972_vm9, %v942_v39, 0.0  ;;  %v968_v43 = vperm.slane %v967_v12, 0 }
 0x2f3   : > { %v969_v40 = vperm.slane %v967_v12, 1  ;;  %v986_v2 = vmul.f32 %v984_v10, %v2787_v52  ;;  %v3639_v52 = vmov 0  ;;  %vm3567_vm13 = vcmp.lt.s32.totalorder %v2496_v33, 83 }
 0x2f4   : > { %v934_v50 = vadd.f32 %v932_v18, %v912_v25  ;;  %v935_v16 = vadd.f32 %v933_v21, %v913_v46  ;;  %vm2993_vm0 = vcmp.eq.s32.totalorder %v968_v43, 1  ;;  %vm3569_vm3 = vcmp.lt.s32.totalorder %v2496_v33, 80 }
 0x2f5   : > { %vm2997_vm15 = vcmp.eq.s32.totalorder %v969_v40, 1 }
 0x2f8   : > { %2052 = vset.pattern.permute.xlu1 %v2208_v22  ;;  %v963_v17 = vpop.permute.xlu0 %962  ;;  %v951_v22 = vsel %vm2976_vm1, %v941_v55, 0.0  ;;  %v997_v55 = vsel %vm3564_vm4, 1, %v2202_v0 }
 0x2f9   : > { %v965_v20 = vsel %vm3562_vm10, %v961_v54, %v963_v17  ;;  %v966_v25 = vsel %vm3562_vm10, %v963_v17, %v961_v54  ;;  %1598 = vperm.xlu1 %2052, %v2858_v61   ;;  %v1006_v46 = vpop.permute.xlu2 %1005  ;;  %v998_v21 = vperm.slane %v997_v55, 0  ;;  %v999_v49 = vperm.slane %v997_v55, 1 }
 0x2fa   : > { %v954_v19 = vpop.permute.xlu1 %953  ;;  %v972_v59 = vsel %vm2993_vm0, %v966_v25, 0.0  ;;  %v973_v44 = vsel %vm2997_vm15, %v965_v20, 0.0  ;;  %vm3565_vm10 = vcmp.lt.s32.totalorder %v2496_v33, 125 }
 0x2fb   : > { %v956_v56 = vmul.f32 %v954_v19, %v950_v36  ;;  %v957_v57 = vmul.f32 %v954_v19, %v951_v22  ;;  %v1138_v19 = vpop.f32.mrf.mxu2  ;;  %v1158_v36 = vpop.f32.mrf.mxu3  ;;  %vm3019_vm11 = vcmp.eq.s32.totalorder %v998_v21, 1  ;;  %vm3023_vm4 = vcmp.eq.s32.totalorder %v999_v49, 1 }
 0x2fc   : > { %v3640_v52 = vsel %vm3019_vm11, 4294967295, %v3639_v52 }
 0x2fd   : > { %v958_v42 = vadd.f32 %v956_v56, %v934_v50  ;;  %v959_v54 = vadd.f32 %v957_v57, %v935_v16  ;;  %v987_v50 = vmul.f32 %v984_v10, %v2789_v53  ;;  %v3641_v53 = vmov 0 }
 0x2fe   : > { %v3642_v53 = vsel %vm3023_vm4, 4294967295, %v3641_v53  ;;  %v1021_v10 = vsel %vm1020_vm7, 1, %v2202_v0 }
 0x2ff   : > { %v1022_v55 = vperm.slane %v1021_v10, 0 }
 0x300   : > { %v991_v45 = vpop.permute.xlu0 %990 }
 0x301   : > { %1245 = vperm.xlu1 %2052, %v2872_v1   ;;  %vm3046_vm7 = vcmp.eq.s32.totalorder %v1022_v55, 1 }
 0x302   : > { %v1030_v51 = vpop.permute.xlu2 %1029 }
 0x303   : > { %v976_v39 = vpop.permute.xlu1 %975 }
 0x304   : > { %v978_v60 = vmul.f32 %v976_v39, %v972_v59  ;;  %v979_v18 = vmul.f32 %v976_v39, %v973_v44  ;;  %v1023_v39 = vperm.slane %v1021_v10, 1 }
 0x306   : > { %v980_v16 = vadd.f32 %v978_v60, %v958_v42  ;;  %v981_v17 = vadd.f32 %v979_v18, %v959_v54 }
 0x308   : > { %v988_v25 = vadd.f32 %v986_v2, %v980_v16  ;;  %v989_v12 = vadd.f32 %v987_v50, %v981_v17  ;;  %v1013_v20 = vpop.permute.xlu0 %1012 }
 0x309   : > { %2053 = vset.pattern.permute.xlu1 %v2214_v4 }
 0x30a   : > { %1622 = vperm.xlu1 %2053, %v2858_v61  }
 0x30b   : > { %v993_v22 = vpop.permute.xlu1 %992  ;;  %v1110_v56 = vpop.permute.xlu2 %1109 }
 0x30c   : > { %v995_v4 = vsel %vm3565_vm10, %v991_v45, %v993_v22  ;;  %v996_v57 = vsel %vm3565_vm10, %v993_v22, %v991_v45  ;;  %v1139_v43 = vadd.f32 %v1138_v19, %v1110_v56  ;;  %v1159_v40 = vadd.f32 %v1158_v36, %v1110_v56 }
 0x30d   : > { %v1002_v42 = vsel %vm3019_vm11, %v995_v4, 0.0  ;;  %v1003_v54 = vsel %vm3023_vm4, %v996_v57, 0.0  ;;  %v3643_v45 = vmov 0  ;;  %vm3050_vm10 = vcmp.eq.s32.totalorder %v1023_v39, 1 }
 0x30e   : > { %v1008_v59 = vmul.f32 %v1006_v46, %v1002_v42  ;;  %v1009_v44 = vmul.f32 %v1006_v46, %v1003_v54  ;;  %v3036_v60 = vmax.f32 %v1139_v43, 0.0  ;;  %v3038_v18 = vmax.f32 %v1159_v40, 0.0  ;;  %v3297_v39 = vld [vmem:[%s3531_s1] ss:$2 sm:$0x3] }
 0x30f   : > { %v3644_v45 = vsel %vm3046_vm7, 4294967295, %v3643_v45  ;;  %v3645_v46 = vmov 0 }
 0x310   : > { %v1010_v21 = vadd.f32 %v1008_v59, %v988_v25  ;;  %v1011_v49 = vadd.f32 %v1009_v44, %v989_v12  ;;  %v1037_v2 = vpop.permute.xlu0 %1036  ;;  %1167 = vrot.lane.b32.xlu0 %v3038_v18, %s2219_s30  ;;  %1165 = vrot.lane.b32.xlu2 %v3036_v60, %s2219_s30  ;;  %v3646_v46 = vsel %vm3050_vm10, 4294967295, %v3645_v46  ;;  %s2227_s30 = smov 85   ;;  %v3303_v59 = vld [vmem:[%s3531_s1 + $0x1] ss:$2 sm:$0x3] }
 0x312   : > { %1261 = vperm.xlu1 %2053, %v2872_v1  }
 0x313   : > { %v1015_v50 = vpop.permute.xlu1 %1014  ;;  %v1059_v42 = vpop.permute.xlu2 %1058 }
 0x314   : > { %v1017_v16 = vsel %vm3567_vm13, %v1013_v20, %v1015_v50  ;;  %v1018_v17 = vsel %vm3567_vm13, %v1015_v50, %v1013_v20  ;;  %vm3647_vm13 = vcmp.lt.s32.totalorder %v2601_v13, 13 }
 0x315   : > { %v1026_v25 = vsel %vm3046_vm7, %v1017_v16, 0.0  ;;  %v1027_v12 = vsel %vm3050_vm10, %v1018_v17, 0.0  ;;  %vm1062_vm10 = vcmp.lt.s32.totalorder %v2496_v33, 77 }
 0x316   : > { %v1032_v19 = vmul.f32 %v1030_v51, %v1026_v25  ;;  %v1033_v36 = vmul.f32 %v1030_v51, %v1027_v12  ;;  %v1043_v51 = vsel %vm3647_vm13, 1, %v2202_v0 }
 0x317   : > { %v1044_v43 = vperm.slane %v1043_v51, 0  ;;  %v1045_v40 = vperm.slane %v1043_v51, 1 }
 0x318   : > { %v1039_v10 = vpop.permute.xlu0 %1038  ;;  %1180 = vrot.lane.b32.xlu0 %v3036_v60, %s2218_s28  ;;  %1196 = vrot.lane.b32.xlu2 %v3036_v60, %s2221_s15  ;;  %v1034_v22 = vadd.f32 %v1032_v19, %v1010_v21  ;;  %v1035_v56 = vadd.f32 %v1033_v36, %v1011_v49  ;;  %v1690_v19 = vld [vmem:[#allocation5 + $0x8] sm:$0xff] }
 0x319   : > { %v1041_v20 = vsel %vm3569_vm3, %v1037_v2, %v1039_v10  ;;  %v1042_v4 = vsel %vm3569_vm3, %v1039_v10, %v1037_v2  ;;  %vm3648_vm3 = vcmp.lt.s32.totalorder %v2490_v31, 13  ;;  %vm3091_vm4 = vcmp.eq.s32.totalorder %v1044_v43, 1 }
 0x31a   : > { %2054 = vset.pattern.permute.xlu1 %v2215_v6  ;;  %vm1065_vm7 = vmand %vm3647_vm13, %vm3648_vm3  ;;  %vm3095_vm11 = vcmp.eq.s32.totalorder %v1045_v40, 1  ;;  %v1048_v13 = vsel %vm3091_vm4, %v1041_v20, 0.0  ;;  %vm3657_vm13 = vcmask 1043456  }
 0x31b   : > { %1643 = vperm.xlu1 %2054, %v2858_v61   ;;  %v3076_v57 = vpop.permute.xlu1 %1428  ;;  %v1066_v31 = vsel %vm1065_vm7, 1, %v2202_v0  ;;  %v1049_v44 = vsel %vm3095_vm11, %v1042_v4, 0.0  ;;  %vm3658_vm8 = vmmov %vm3657_vm13 }
 0x31c   : > { %v1067_v50 = vperm.slane %v1066_v31, 0  ;;  %v1068_v16 = vperm.slane %v1066_v31, 1 }
 0x31e   : > { %vm3111_vm3 = vcmp.eq.s32.totalorder %v1067_v50, 1  ;;  %vm3115_vm7 = vcmp.eq.s32.totalorder %v1068_v16, 1 }
 0x320   : > { %v1061_v54 = vpop.permute.xlu0 %1060  ;;  %1198 = vrot.lane.b32.xlu0 %v3038_v18, %s2221_s15  ;;  %1212 = vrot.lane.b32.xlu2 %v3036_v60, %s2222_s27  ;;  %s2228_s15 = smov 75  }
 0x321   : > { %v1063_v6 = vsel %vm1062_vm10, %v1059_v42, %v1061_v54  ;;  %v1064_v55 = vsel %vm1062_vm10, %v1061_v54, %v1059_v42 }
 0x323   : > { %1277 = vperm.xlu1 %2054, %v2872_v1  }
 0x324   : > { %v1052_v21 = vpop.permute.xlu1 %1051 }
 0x325   : > { %v1054_v49 = vmul.f32 %v1052_v21, %v1048_v13  ;;  %v1055_v2 = vmul.f32 %v1052_v21, %v1049_v44 }
 0x327   : > { %v1056_v17 = vadd.f32 %v1054_v49, %v1034_v22  ;;  %v1057_v25 = vadd.f32 %v1055_v2, %v1035_v56  ;;  %v1071_v22 = vsel %vm3111_vm3, %v1063_v6, 0.0  ;;  %v1072_v56 = vsel %vm3115_vm7, %v1064_v55, 0.0 }
 0x328   : > { %1214 = vrot.lane.b32.xlu0 %v3038_v18, %s2222_s27  ;;  %1236 = vrot.lane.b32.xlu2 %v3036_v60, %s2223_s16  ;;  %v3109_v12 = vpop.permute.xlu0 %1522  ;;  %s2229_s27 = smov 5  }
 0x32b   : > { %1182 = vrot.lane.b32.xlu1 %v3038_v18, %s2218_s28 }
 0x32c   : > { %2055 = vset.pattern.permute.xlu1 %v2217_v8 }
 0x32d   : > { %v1075_v10 = vpop.permute.xlu1 %1074 }
 0x32e   : > { %v1077_v20 = vmul.f32 %v1075_v10, %v1071_v22  ;;  %v1078_v4 = vmul.f32 %v1075_v10, %v1072_v56 }
 0x330   : > { %v1079_v51 = vadd.f32 %v1077_v20, %v1056_v17  ;;  %v1080_v43 = vadd.f32 %v1078_v4, %v1057_v25  ;;  %1238 = vrot.lane.b32.xlu0 %v3038_v18, %s2223_s16  ;;  %1252 = vrot.lane.b32.xlu2 %v3036_v60, %s2224_s13  ;;  %s2230_s16 = smov 123  }
 0x331   : > { %v707_v40 = vpop.permute.xlu0 %706 }
 0x332   : > { %v709_v8 = vmul.f32 %v707_v40, %v2479_v29  ;;  %v710_v42 = vmul.f32 %v707_v40, %v2481_v30  ;;  %v800_v29 = vmul.f32 %v2867_v63, %v794_v34  ;;  %v801_v30 = vmul.f32 %v2867_v63, %v795_v35  ;;  %v3176_v63 = vpop.permute.xlu2 %1503 }
 0x334   : > { %v711_v54 = vadd.f32 %v709_v8, %v2656_v14  ;;  %v712_v6 = vadd.f32 %v710_v42, %v2658_v38 }
 0x336   : > { %v733_v55 = vadd.f32 %v2690_v48, %v711_v54  ;;  %v734_v31 = vadd.f32 %v2692_v62, %v712_v6  ;;  %v3136_v13 = vpop.permute.xlu1 %1175  ;;  %v1675_v48 = vrot.slane %v1079_v51, 4  ;;  %v1676_v62 = vrot.slane %v1080_v43, 4 }
 0x338   : > { %v757_v44 = vadd.f32 %v2703_v26, %v733_v55  ;;  %v758_v21 = vadd.f32 %v2705_v11, %v734_v31  ;;  %1254 = vrot.lane.b32.xlu0 %v3038_v18, %s2224_s13  ;;  %1268 = vrot.lane.b32.xlu2 %v3036_v60, %s2225_s18  ;;  %s2231_s13 = smov 53  }
 0x339   : > { %v1577_v10 = vpop.permute.xlu0 %1576 }
 0x33a   : > { %v779_v14 = vadd.f32 %v2759_v5, %v757_v44  ;;  %v780_v38 = vadd.f32 %v2761_v7, %v758_v21  ;;  %v1222_v17 = vpop.permute.xlu2 %1221 }
 0x33c   : > { %v802_v26 = vadd.f32 %v800_v29, %v779_v14  ;;  %v803_v11 = vadd.f32 %v801_v30, %v780_v38 }
 0x33e   : > { %v3157_v23 = vsel %vm3657_vm13, %v802_v26, %v1675_v48  ;;  %v3160_v28 = vsel %vm3658_vm8, %v803_v11, %v1676_v62  ;;  %vm3660_vm13 = vmmov %vm3659_vm14  ;;  %vm3661_vm8 = vcmp.lt.s32.totalorder %v2496_v33, 45 }
 0x33f   : > { %v3162_v34 = vpop.permute.xlu1 %1189 }
 0x340   : > { %1270 = vrot.lane.b32.xlu0 %v3038_v18, %s2225_s18  ;;  %1284 = vrot.lane.b32.xlu2 %v3036_v60, %s2226_s24 }
 0x348   : > { %v3168_v5 = vpop.permute.xlu1 %1546 }
 0x350   : > { %v1206_v7 = vpop.permute.xlu1 %1205 }
 0x359   : > { %v3170_v24 = vpop.permute.xlu1 %1568 }
 0x362   : > { %v3172_v32 = vpop.permute.xlu1 %1229 }
 0x36a   : > { %v1166_v43 = vpop.permute.xlu2 %1165 }
 0x36b   : > { %v3174_v35 = vpop.permute.xlu1 %1598 }
 0x372   : > { %v1197_v54 = vpop.permute.xlu2 %1196 }
 0x373   : > { %v3178_v49 = vpop.permute.xlu1 %1245 }
 0x374   : > { %v1457_v2 = vpop.f32.mrf.mxu2 }
 0x375   : > { %v1458_v50 = vadd.f32 %v1457_v2, %v3076_v57  ;;  %v1477_v16 = vpop.f32.mrf.mxu3 }
 0x376   : > { %v1478_v25 = vadd.f32 %v1477_v16, %v3076_v57 }
 0x377   : > { %v3182_v22 = vmax.f32 %v1458_v50, 0.0 }
 0x378   : > { %v1481_v56 = vmax.f32 %v1478_v25, 0.0 }
 0x379   : > { %v3185_v20 = vmul.f32 %v1577_v10, %v3182_v22  ;;  %1508 = vrot.lane.b32.xlu1 %v3182_v22, %s2225_s18  ;;  %1484 = vrot.lane.b32.xlu2 %v3182_v22, %s2227_s30 }
 0x37a   : > { %v3190_v4 = vmul.f32 %v1577_v10, %v1481_v56  ;;  %1486 = vrot.lane.b32.xlu0 %v1481_v56, %s2227_s30  ;;  %v1213_v29 = vpop.permute.xlu2 %1212  ;;  %s3702_s30 = sld [smem:[#allocation19_spill]] }
 0x37c   : > { %v3192_v51 = vpop.permute.xlu1 %1622 }
 0x381   : > { %1529 = vrot.lane.b32.xlu1 %v3182_v22, %s2228_s15  ;;  %1510 = vrot.lane.b32.xlu2 %v1481_v56, %s2225_s18  ;;  %s2232_s18 = smov 43  }
 0x382   : > { %1555 = vrot.lane.b32.xlu0 %v1481_v56, %s2229_s27  ;;  %v1168_v57 = vpop.permute.xlu0 %1167  ;;  %v1237_v10 = vpop.permute.xlu2 %1236 }
 0x383   : > { %v1169_v40 = vsel %vm3659_vm14, %v1166_v43, %v1168_v57  ;;  %v1170_v8 = vsel %vm3660_vm13, %v1168_v57, %v1166_v43  ;;  %vm3662_vm14 = vmmov %vm3661_vm8  ;;  %vm3663_vm13 = vcmp.lt.s32.totalorder %v2496_v33, 3 }
 0x384   : > { %v3200_v42 = vpop.permute.xlu1 %1261  ;;  %v1172_v2 = vsel %vm2900_vm6, %v1169_v40, 0.0 }
 0x385   : > { %v1179_v3 = vmul.f32 %v3136_v13, %v1172_v2 }
 0x389   : > { %1583 = vrot.lane.b32.xlu1 %v3182_v22, %s2230_s16  ;;  %1531 = vrot.lane.b32.xlu2 %v1481_v56, %s2228_s15 }
 0x38a   : > { %1607 = vrot.lane.b32.xlu0 %v1481_v56, %s2231_s13  ;;  %v1181_v6 = vpop.permute.xlu0 %1180 }
 0x38d   : > { %v3204_v55 = vpop.permute.xlu1 %1643 }
 0x391   : > { %1553 = vrot.lane.b32.xlu2 %v3182_v22, %s2229_s27  ;;  %1666 = vperm.xlu1 %2055, %v2858_v61  }
 0x392   : > { %1631 = vrot.lane.b32.xlu0 %v1481_v56, %s2218_s28  ;;  %v1199_v31 = vpop.permute.xlu0 %1198 }
 0x393   : > { %v1200_v44 = vsel %vm3661_vm8, %v1197_v54, %v1199_v31  ;;  %v1201_v21 = vsel %vm3662_vm14, %v1199_v31, %v1197_v54  ;;  %vm3664_vm8 = vmmov %vm3663_vm13  ;;  %vm3673_vm14 = vnez %v3644_v45 }
 0x394   : > { %v1202_v30 = vsel %vm2972_vm9, %v1201_v21, 0.0  ;;  %v1203_v14 = vsel %vm2976_vm1, %v1200_v44, 0.0  ;;  %vm3665_vm9 = vcmp.lt.s32.totalorder %v2496_v33, 48 }
 0x395   : > { %v1208_v38 = vmul.f32 %v1206_v7, %v1202_v30  ;;  %v1209_v48 = vmul.f32 %v1206_v7, %v1203_v14  ;;  %v3217_v62 = vpop.permute.xlu1 %1277  ;;  %v1171_v7 = vsel %vm2896_vm5, %v1170_v8, 0.0  ;;  %vm3666_vm1 = vmmov %vm3665_vm9  ;;  %vm3667_vm5 = vcmp.lt.s32.totalorder %v2496_v33, 125 }
 0x396   : > { %v1178_v43 = vmul.f32 %v3136_v13, %v1171_v7  ;;  %vm3668_vm6 = vmmov %vm3667_vm5  ;;  %v1233_v30 = vmul.f32 %v3172_v32, %v3038_v18 }
 0x399   : > { %1585 = vrot.lane.b32.xlu2 %v1481_v56, %s2230_s16  ;;  %2058 = vset.pattern.permute.xlu1 %v2202_v0  ;;  %s1911_s16 = sshll.u32 %s2335_s22, 5 }
 0x39a   : > { %1652 = vrot.lane.b32.xlu0 %v1481_v56, %s2232_s18  ;;  %v1215_v61 = vpop.permute.xlu0 %1214 }
 0x39b   : > { %v1216_v26 = vsel %vm3663_vm13, %v1213_v29, %v1215_v61  ;;  %v1217_v9 = vsel %vm3664_vm8, %v1215_v61, %v1213_v29  ;;  %v1232_v29 = vmul.f32 %v3172_v32, %v3036_v60  ;;  %vm3674_vm13 = vnez %v3646_v46 }
 0x39c   : > { %v1218_v27 = vsel %vm2993_vm0, %v1217_v9, 0.0  ;;  %v1219_v11 = vsel %vm2997_vm15, %v1216_v26, 0.0  ;;  %vm3671_vm0 = vcmp.lt.s32.totalorder %v2496_v33, 83  ;;  %vm3675_vm8 = vcmp.lt.s32.totalorder %v2496_v33, 80 }
 0x39d   : > { %v1224_v50 = vmul.f32 %v1222_v17, %v1218_v27  ;;  %v1225_v16 = vmul.f32 %v1222_v17, %v1219_v11  ;;  %v1183_v25 = vpop.permute.xlu1 %1182  ;;  %vm3672_vm15 = vmmov %vm3671_vm0 }
 0x39e   : > { %v1184_v56 = vsel %vm3665_vm9, %v1181_v6, %v1183_v25  ;;  %v1185_v41 = vsel %vm3666_vm1, %v1183_v25, %v1181_v6  ;;  %vm3676_vm9 = vmmov %vm3675_vm8 }
 0x39f   : > { %v1186_v47 = vsel %vm2940_vm12, %v1185_v41, 0.0  ;;  %v1187_v15 = vsel %vm2944_vm2, %v1184_v56, 0.0  ;;  %vm3669_vm12 = vnez %v3640_v52  ;;  %vm3670_vm2 = vnez %v3642_v53 }
 0x3a0   : > { %v1192_v17 = vmul.f32 %v3162_v34, %v1186_v47  ;;  %v1193_v57 = vmul.f32 %v3162_v34, %v1187_v15 }
 0x3a1   : > { %1605 = vrot.lane.b32.xlu2 %v3182_v22, %s2231_s13  ;;  %s531_s13 = scalar_lea.vmem [#allocation7], %s1874_s17  ;;  %s1768_s17 = scalar_lea.sflag [#allocation4], %s2409_s10 }
 0x3a2   : > { %v1194_v40 = vadd.f32 %v1192_v17, %v1178_v43  ;;  %v1195_v8 = vadd.f32 %v1193_v57, %v1179_v3  ;;  %1286 = vrot.lane.b32.xlu0 %v3038_v18, %s2226_s24  ;;  %v1239_v37 = vpop.permute.xlu0 %1238  ;;  %s3719_s24 = sld [smem:[#allocation20_spill]]  ;;  %s1780_s26 = sshll.u32 %s531_s13, 4  ;;  %s1781_s26 = int_to_ptr.vmem [resolvable:$true] %s1780_s26 }
 0x3a3   : > { %v1240_v58 = vsel %vm3667_vm5, %v1237_v10, %v1239_v37  ;;  %v1241_v54 = vsel %vm3668_vm6, %v1239_v37, %v1237_v10  ;;  %vm1536_vm5 = vcmp.lt.s32.totalorder %v3303_v59, 11 }
 0x3a4   : > { %v1210_v13 = vadd.f32 %v1208_v38, %v1194_v40  ;;  %v1211_v6 = vadd.f32 %v1209_v48, %v1195_v8  ;;  %v1242_v34 = vsel %vm3669_vm12, %v1240_v58, 0.0  ;;  %v1243_v31 = vsel %vm3670_vm2, %v1241_v54, 0.0  ;;  %v1253_v38 = vpop.permute.xlu2 %1252 }
 0x3a5   : > { %v1248_v44 = vmul.f32 %v3178_v49, %v1242_v34  ;;  %v1249_v21 = vmul.f32 %v3178_v49, %v1243_v31  ;;  %vm1488_vm2 = vcmp.lt.s32.totalorder %v2496_v33, 85 }
 0x3a6   : > { %v1226_v14 = vadd.f32 %v1224_v50, %v1210_v13  ;;  %v1227_v61 = vadd.f32 %v1225_v16, %v1211_v6 }
 0x3a8   : > { %v1234_v48 = vadd.f32 %v1232_v29, %v1226_v14  ;;  %v1235_v26 = vadd.f32 %v1233_v30, %v1227_v61  ;;  %s1779_s29 = scalar_lea.hbm %s3719_s24, %s1911_s16 }
 0x3a9   : > { %1629 = vrot.lane.b32.xlu2 %v3182_v22, %s2218_s28  ;;  %s1782_s22 = sshll.u32 %s1779_s29, 4  ;;  %s1783_s22 = int_to_ptr.hbm [resolvable:$true] %s1782_s22 }
 0x3aa   : > { %v1250_v52 = vadd.f32 %v1248_v44, %v1234_v48  ;;  %v1251_v53 = vadd.f32 %v1249_v21, %v1235_v26  ;;  %v1255_v9 = vpop.permute.xlu0 %1254  ;;  %s2139_s20 = sshra.s32 %s1783_s22, 4  ;;  %s2140_s20 = int_to_ptr.hbm [resolvable:$true] %s2139_s20 }
 0x3ab   : > { %v1256_v49 = vsel %vm3671_vm0, %v1253_v38, %v1255_v9  ;;  %v1257_v60 = vsel %vm3672_vm15, %v1255_v9, %v1253_v38  ;;  %s2141_s23 = scalar_lea.hbm %s2140_s20, 32  ;;  %p2146_p11 = scmp.lt.s32.totalorder %s2140_s20, %s3719_s24 }
 0x3ac   : > { %v1258_v18 = vsel %vm3673_vm14, %v1256_v49, 0.0  ;;  %v1259_v32 = vsel %vm3674_vm13, %v1257_v60, 0.0  ;;  %v1269_v50 = vpop.permute.xlu2 %1268  ;;  %vm1533_vm13 = vcmp.lt.s32.totalorder %v2496_v33, 75  ;;  %p2142_p1 = scmp.ne.s32.totalorder %s2140_s20, %s2141_s23 }
 0x3ad   : > { %v1264_v27 = vmul.f32 %v3200_v42, %v1258_v18  ;;  %v1265_v11 = vmul.f32 %v3200_v42, %v1259_v32 }
 0x3ae   : > { %p2143_p4 = pnand %p2142_p1, %p2381_p7 }
 0x3af   : > { %v1266_v7 = vadd.f32 %v1264_v27, %v1250_v52  ;;  %v1267_v2 = vadd.f32 %v1265_v11, %v1251_v53 }
 0x3b0   : > { %p2144_p8 = pneg %p2143_p4 }
 0x3b1   : > { %1650 = vrot.lane.b32.xlu2 %v3182_v22, %s2232_s18 }
 0x3b2   : > { %v1271_v16 = vpop.permute.xlu0 %1270 }
 0x3b3   : > { %v1272_v25 = vsel %vm3675_vm8, %v1269_v50, %v1271_v16  ;;  %v1273_v45 = vsel %vm3676_vm9, %v1271_v16, %v1269_v50  ;;  %vm1612_vm8 = vcmp.lt.s32.totalorder %v3297_v39, 11  ;;  %v1590_v16 = vsel %vm1536_vm5, 1, %v2202_v0 }
 0x3b4   : > { %v1274_v46 = vsel %vm3091_vm4, %v1272_v25, 0.0  ;;  %v1275_v10 = vsel %vm3095_vm11, %v1273_v45, 0.0  ;;  %v3292_v47 = vpop.permute.xlu2 %1284  ;;  %vm1491_vm4 = vcmp.ge.s32.totalorder %v3297_v39, 5  ;;  %vm1492_vm11 = vcmp.ge.s32.totalorder %v3303_v59, 5 }
 0x3b5   : > { %v1280_v42 = vmul.f32 %v3217_v62, %v1274_v46  ;;  %v1281_v56 = vmul.f32 %v3217_v62, %v1275_v10  ;;  %vm1493_vm1 = vmand %vm1491_vm4, %vm1492_vm11  ;;  %v1514_v57 = vsel %vm1491_vm4, 1, %v2202_v0  ;;  %v1560_v30 = vsel %vm1492_vm11, 1, %v2202_v0 }
 0x3b6   : > { %v1494_v40 = vsel %vm1493_vm1, 1, %v2202_v0  ;;  %vm1537_vm6 = vmand %vm1491_vm4, %vm1536_vm5  ;;  %v1515_v8 = vperm.slane %v1514_v57, 0  ;;  %v1516_v37 = vperm.slane %v1514_v57, 1  ;;  %v1561_v9 = vperm.slane %v1560_v30, 0 }
 0x3b7   : > { %v3287_v41 = vadd.f32 %v1280_v42, %v1266_v7  ;;  %v3289_v22 = vadd.f32 %v1281_v56, %v1267_v2  ;;  %v1495_v58 = vperm.slane %v1494_v40, 0  ;;  %v1496_v54 = vperm.slane %v1494_v40, 1  ;;  %vm3685_vm4 = vmmov %vm3676_vm9 }
 0x3b8   : > { %v1538_v13 = vsel %vm1537_vm6, 1, %v2202_v0  ;;  %vm3316_vm12 = vcmp.eq.s32.totalorder %v1515_v8, 1  ;;  %vm3321_vm0 = vcmp.eq.s32.totalorder %v1516_v37, 1  ;;  %v1562_v49 = vperm.slane %v1560_v30, 1 }
 0x3b9   : > { %1293 = vperm.xlu2 %2056, %v2872_v1   ;;  %v1539_v21 = vperm.slane %v1538_v13, 0  ;;  %v1540_v29 = vperm.slane %v1538_v13, 1  ;;  %vm3328_vm15 = vcmp.eq.s32.totalorder %v1495_v58, 1  ;;  %vm3332_vm14 = vcmp.eq.s32.totalorder %v1496_v54, 1 }
 0x3ba   : > { %v1591_v57 = vperm.slane %v1590_v16, 0  ;;  %v1592_v40 = vperm.slane %v1590_v16, 1 }
 0x3bb   : > { %vm3342_vm1 = vcmp.eq.s32.totalorder %v1539_v21, 1  ;;  %vm3346_vm6 = vcmp.eq.s32.totalorder %v1540_v29, 1  ;;  %v1635_v21 = vsel %vm1612_vm8, 1, %v2202_v0 }
 0x3d3   : > { %v1485_v15 = vpop.permute.xlu2 %1484 }
 0x3db   : > { %v1511_v43 = vpop.permute.xlu2 %1510 }
 0x3e3   : > { %v1532_v3 = vpop.permute.xlu2 %1531 }
 0x3eb   : > { %v1554_v1 = vpop.permute.xlu2 %1553  ;;  %v1509_v62 = vpop.permute.xlu1 %1508 }
 0x3ec   : > { %v1487_v17 = vpop.permute.xlu0 %1486  ;;  %v1512_v48 = vsel %vm3676_vm9, %v1509_v62, %v1511_v43  ;;  %v1513_v26 = vsel %vm3685_vm4, %v1511_v43, %v1509_v62  ;;  %vm1613_vm9 = vmand %vm1612_vm8, %vm1492_vm11  ;;  %vm1557_vm11 = vcmp.lt.s32.totalorder %v2496_v33, 5 }
 0x3ed   : > { %v1489_v52 = vsel %vm1488_vm2, %v1485_v15, %v1487_v17  ;;  %v1490_v53 = vsel %vm1488_vm2, %v1487_v17, %v1485_v15  ;;  %v1519_v11 = vsel %vm3316_vm12, %v1513_v26, 0.0  ;;  %v1520_v7 = vsel %vm3321_vm0, %v1512_v48, 0.0 }
 0x3ee   : > { %v1499_v2 = vsel %vm3328_vm15, %v1490_v53, 0.0  ;;  %v1500_v50 = vsel %vm3332_vm14, %v1489_v52, 0.0  ;;  %v1614_v42 = vsel %vm1613_vm9, 1, %v2202_v0  ;;  %v1525_v56 = vmul.f32 %v3109_v12, %v1519_v11  ;;  %vm1657_vm15 = vmand %vm1612_vm8, %vm1536_vm5  ;;  %v1691_v11 = vld [vmem:[%s3702_s30] sm:$0xff] }
 0x3ef   : > { %v1526_v15 = vmul.f32 %v3109_v12, %v1520_v7  ;;  %v1506_v43 = vmul.f32 %v3176_v63, %v1499_v2  ;;  %vm3375_vm12 = vcmp.eq.s32.totalorder %v1561_v9, 1  ;;  %vm3379_vm2 = vcmp.eq.s32.totalorder %v1562_v49, 1  ;;  %v1692_v7 = vld [vmem:[%s3702_s30 + $0x8] sm:$0xff]  ;;  %1695 = vperm.xlu0 %2057, %v1691_v11  }
 0x3f0   : > { %vm1587_vm0 = vcmp.lt.s32.totalorder %v2496_v33, 123  ;;  %v1616_v44 = vperm.slane %v1614_v42, 1  ;;  %vm3397_vm14 = vcmp.eq.s32.totalorder %v1591_v57, 1  ;;  %v1636_v48 = vperm.slane %v1635_v21, 0  ;;  %1700 = vperm.xlu1 %2058, %v1692_v7  }
 0x3f1   : > { %v1527_v13 = vadd.f32 %v1525_v56, %v1506_v43  ;;  %v1637_v26 = vperm.slane %v1635_v21, 1  ;;  %v1658_v52 = vsel %vm1657_vm15, 1, %v2202_v0  ;;  %vm1609_vm5 = vcmp.lt.s32.totalorder %v2496_v33, 53 }
 0x3f2   : > { %vm3419_vm4 = vcmp.eq.s32.totalorder %v1616_v44, 1  ;;  %vm3707_vm9 = vcmp.lt.s32.totalorder %v2496_v33, 48  ;;  %vm3713_vm15 = vcmask 1043456  }
 0x3f3   : > { %v3314_v6 = vpop.permute.xlu2 %1585  ;;  %v1530_v38 = vpop.permute.xlu1 %1529 }
 0x3f4   : > { %v1556_v31 = vpop.permute.xlu0 %1555  ;;  %v1534_v32 = vsel %vm1533_vm13, %v1530_v38, %v1532_v3  ;;  %v1535_v27 = vsel %vm1533_vm13, %v1532_v3, %v1530_v38  ;;  %v1507_v3 = vmul.f32 %v3176_v63, %v1500_v50  ;;  %v1615_v63 = vperm.slane %v1614_v42, 0 }
 0x3f5   : > { %v1543_v45 = vsel %vm3342_vm1, %v1535_v27, 0.0  ;;  %v1544_v46 = vsel %vm3346_vm6, %v1534_v32, 0.0  ;;  %v1558_v58 = vsel %vm1557_vm11, %v1554_v1, %v1556_v31  ;;  %v1559_v12 = vsel %vm1557_vm11, %v1556_v31, %v1554_v1  ;;  %vm3708_vm11 = vmmov %vm3707_vm9 }
 0x3f6   : > { %v1549_v8 = vmul.f32 %v3168_v5, %v1543_v45  ;;  %v1550_v37 = vmul.f32 %v3168_v5, %v1544_v46  ;;  %v1528_v34 = vadd.f32 %v1526_v15, %v1507_v3  ;;  %v1565_v5 = vsel %vm3375_vm12, %v1559_v12, 0.0 }
 0x3f7   : > { %v1566_v1 = vsel %vm3379_vm2, %v1558_v58, 0.0  ;;  %vm3401_vm13 = vcmp.eq.s32.totalorder %v1592_v40, 1  ;;  %v1571_v53 = vmul.f32 %v3170_v24, %v1565_v5  ;;  %vm3415_vm8 = vcmp.eq.s32.totalorder %v1615_v63, 1 }
 0x3f8   : > { %v1551_v30 = vadd.f32 %v1549_v8, %v1527_v13  ;;  %v1552_v14 = vadd.f32 %v1550_v37, %v1528_v34  ;;  %v1572_v9 = vmul.f32 %v3170_v24, %v1566_v1  ;;  %v1659_v27 = vperm.slane %v1658_v52, 0 }
 0x3f9   : > { %v1660_v24 = vperm.slane %v1658_v52, 1  ;;  %vm3429_vm1 = vcmp.eq.s32.totalorder %v1636_v48, 1  ;;  %vm3433_vm6 = vcmp.eq.s32.totalorder %v1637_v26, 1  ;;  %vm1654_vm12 = vcmp.lt.s32.totalorder %v2496_v33, 43  ;;  %v1689_v33 = vld [vmem:[#allocation5] sm:$0xff] }
 0x3fa   : > { %v1573_v0 = vadd.f32 %v1571_v53, %v1551_v30  ;;  %v1574_v32 = vadd.f32 %v1572_v9, %v1552_v14  ;;  %vm3446_vm2 = vcmp.eq.s32.totalorder %v1659_v27, 1  ;;  %v2061_v27 = vld [vmem:[%s2415_s14] sm:$0xff] }
 0x3fb   : > { %v1606_v25 = vpop.permute.xlu2 %1605  ;;  %v1584_v54 = vpop.permute.xlu1 %1583 }
 0x3fc   : > { %v1608_v10 = vpop.permute.xlu0 %1607  ;;  %v1588_v59 = vsel %vm1587_vm0, %v1584_v54, %v3314_v6  ;;  %v1589_v39 = vsel %vm1587_vm0, %v3314_v6, %v1584_v54  ;;  %v1582_v15 = vadd.f32 %v3190_v4, %v1574_v32  ;;  %vm3450_vm0 = vcmp.eq.s32.totalorder %v1660_v24, 1 }
 0x3fd   : > { %v1595_v49 = vsel %vm3397_vm14, %v1588_v59, 0.0  ;;  %v1596_v60 = vsel %vm3401_vm13, %v1589_v39, 0.0  ;;  %v1610_v2 = vsel %vm1609_vm5, %v1606_v25, %v1608_v10  ;;  %v1611_v50 = vsel %vm1609_vm5, %v1608_v10, %v1606_v25  ;;  %vm3714_vm14 = vmmov %vm3713_vm15 }
 0x3fe   : > { %v1601_v46 = vmul.f32 %v3174_v35, %v1595_v49  ;;  %v1602_v42 = vmul.f32 %v3174_v35, %v1596_v60  ;;  %v1581_v10 = vadd.f32 %v3185_v20, %v1573_v0  ;;  %v1619_v35 = vsel %vm3415_vm8, %v1610_v2, 0.0 }
 0x3ff   : > { %v1620_v17 = vsel %vm3419_vm4, %v1611_v50, 0.0  ;;  %v1625_v13 = vmul.f32 %v3192_v51, %v1619_v35 }
 0x400   : > { %v1603_v40 = vadd.f32 %v1601_v46, %v1581_v10  ;;  %v1604_v8 = vadd.f32 %v1602_v42, %v1582_v15  ;;  %v1626_v34 = vmul.f32 %v3192_v51, %v1620_v17  ;;  %v2063_v42 = vld [vmem:[%s2415_s14 + $0x10] sm:$0xff] }
 0x402   : > { %v1627_v5 = vadd.f32 %v1625_v13, %v1603_v40  ;;  %v1628_v1 = vadd.f32 %v1626_v34, %v1604_v8 }
 0x403   : > { %v1630_v61 = vpop.permute.xlu2 %1629  ;;  %v1667_v12 = vpop.permute.xlu1 %1666 }
 0x404   : > { %v1632_v38 = vpop.permute.xlu0 %1631 }
 0x405   : > { %v1633_v56 = vsel %vm3707_vm9, %v1630_v61, %v1632_v38  ;;  %v1634_v25 = vsel %vm3708_vm11, %v1632_v38, %v1630_v61 }
 0x406   : > { %v1640_v20 = vsel %vm3429_vm1, %v1633_v56, 0.0  ;;  %v1641_v4 = vsel %vm3433_vm6, %v1634_v25, 0.0  ;;  %v2064_v25 = vld [vmem:[%s2415_s14 + $0x18] sm:$0xff] }
 0x407   : > { %v1646_v44 = vmul.f32 %v3204_v55, %v1640_v20  ;;  %v1647_v21 = vmul.f32 %v3204_v55, %v1641_v4 }
 0x409   : > { %v1648_v30 = vadd.f32 %v1646_v44, %v1627_v5  ;;  %v1649_v14 = vadd.f32 %v1647_v21, %v1628_v1 }
 0x40b   : > { %v1651_v43 = vpop.permute.xlu2 %1650 }
 0x40c   : > { %v1653_v57 = vpop.permute.xlu0 %1652 }
 0x40d   : > { %v1655_v37 = vsel %vm1654_vm12, %v1651_v43, %v1653_v57  ;;  %v1656_v58 = vsel %vm1654_vm12, %v1653_v57, %v1651_v43 }
 0x40e   : > { %v1663_v54 = vsel %vm3446_vm2, %v1655_v37, 0.0  ;;  %v1664_v63 = vsel %vm3450_vm0, %v1656_v58, 0.0 }
 0x40f   : > { %v1669_v31 = vmul.f32 %v1667_v12, %v1663_v54  ;;  %v1670_v29 = vmul.f32 %v1667_v12, %v1664_v63 }
 0x411   : > { %v1671_v61 = vadd.f32 %v1669_v31, %v1648_v30  ;;  %v1672_v38 = vadd.f32 %v1670_v29, %v1649_v14 }
 0x413   : > { %v1294_v39 = vpop.permute.xlu2 %1293  ;;  %v1681_v9 = vrot.slane %v1671_v61, 4  ;;  %v1682_v49 = vrot.slane %v1672_v38, 4 }
 0x414   : > { %v1287_v59 = vpop.permute.xlu0 %1286 }
 0x415   : > { %v1288_v48 = vsel %vm1062_vm10, %v3292_v47, %v1287_v59  ;;  %v1289_v51 = vsel %vm1062_vm10, %v1287_v59, %v3292_v47  ;;  %vm3715_vm10 = vcmask 130048  }
 0x416   : > { %v1290_v55 = vsel %vm3111_vm3, %v1288_v48, 0.0  ;;  %v1291_v26 = vsel %vm3115_vm7, %v1289_v51, 0.0  ;;  %vm3716_vm3 = vmmov %vm3715_vm10 }
 0x417   : > { %v1296_v52 = vmul.f32 %v1294_v39, %v1290_v55  ;;  %v1297_v53 = vmul.f32 %v1294_v39, %v1291_v26  ;;  %vm3717_vm7 = vmmov %vm3716_vm3 }
 0x418   : > { %vm3718_vm13 = vmmov %vm3716_vm3 }
 0x419   : > { %v1298_v60 = vadd.f32 %v1296_v52, %v3287_v41  ;;  %v1299_v6 = vadd.f32 %v1297_v53, %v3289_v22 }
 0x41b   : > { %v1687_v18 = vsel %vm3713_vm15, %v1298_v60, %v1681_v9  ;;  %v1688_v0 = vsel %vm3714_vm14, %v1299_v6, %v1682_v49 }
 0x41c   : > { %1723 = vmatpush.msra.mxu0 %v1687_v18  ;;  %1746 = vmatpush.msra.mxu1 %v1688_v0 }
 0x41e   : > { %1724 = vmatpush.msra.mxu0 %v3157_v23  ;;  %1747 = vmatpush.msra.mxu1 %v3160_v28  ;;  %v2062_v28 = vld [vmem:[%s2415_s14 + $0x8] sm:$0xff]  ;;  %s2145_s14 = scalar_lea.hbm %s3719_s24, 64 }
 0x41f   : > { %1901 = vmatmul.msk.f32.vlgmr.msra.gmra.mxu0 %vm3715_vm10, %v1689_v33  ;;  %1903 = vmatmul.msk.f32.vlgmr.msra.gmra.mxu1 %vm3716_vm3, %v1689_v33  ;;  %p2147_p9 = scmp.lt.s32.totalorder %s2145_s14, %s2141_s23 }
 0x421   : > { %p2148_p2 = por %p2147_p9, %p2146_p11 }
 0x423   : > { %p2149_p10 = pnand %p2148_p2, %p2144_p8 }
 0x427   : > { %1902 = vmatmul.msk.f32.gmra.mxu0 %vm3717_vm7, %v1690_v19  ;;  %1904 = vmatmul.msk.f32.gmra.mxu1 %vm3718_vm13, %v1690_v19 }
 0x461   : > { %v1696_v36 = vpop.permute.xlu0 %1695 }
 0x462   : > { %v1701_v2 = vpop.permute.xlu1 %1700 }
 0x49c   : > { %v1726_v41 = vpop.f32.mrf.mxu0  ;;  %v1749_v22 = vpop.f32.mrf.mxu1 }
 0x49d   : > { %v1727_v47 = vadd.f32 %v1726_v41, %v1696_v36  ;;  %v1750_v32 = vadd.f32 %v1749_v22, %v1696_v36 }
 0x49f   : > { %v1755_v23 = vadd.f32 %v2061_v27, %v1727_v47  ;;  %v1756_v24 = vadd.f32 %v2062_v28, %v1750_v32 }
 0x4a1   : > { %v1759_v11 = vmax.f32 %v1755_v23, 0.0  ;;  %v1760_v7 = vmax.f32 %v1756_v24, 0.0 }
 0x4a3   : > { %1763 = vst [vmem:[%s531_s13] sm:$0xff] %v1759_v11 }
 0x4a4   : > { %1764 = vst [vmem:[%s531_s13 + $0x8] sm:$0xff] %v1760_v7  ;;  %v1729_v50 = vpop.f32.mrf.mxu0  ;;  %v1752_v16 = vpop.f32.mrf.mxu1 }
 0x4a5   : > { %v1730_v45 = vadd.f32 %v1729_v50, %v1701_v2  ;;  %v1753_v46 = vadd.f32 %v1752_v16, %v1701_v2 }
 0x4a7   : > { %v1757_v56 = vadd.f32 %v2063_v42, %v1730_v45  ;;  %v1758_v10 = vadd.f32 %v2064_v25, %v1753_v46 }
 0x4a9   : > { %v1761_v15 = vmax.f32 %v1757_v56, 0.0  ;;  %v1762_v43 = vmax.f32 %v1758_v10, 0.0 }
 0x4ab   : > { %1765 = vst [vmem:[%s531_s13 + $0x10] sm:$0xff] %v1761_v15 }
 0x4ac   : > { %1766 = vst [vmem:[%s531_s13 + $0x18] sm:$0xff] %v1762_v43 }
 0x4ad   : > { %2152 = shalt.err (!%p2149_p10)
}
 0x4ae   : > { %s2233_s10 = smov 256   ;;  %s3720_s13 = smov 16  }
 0x4af   : > { %1922 = dma.vmem_to_hbm [thread:$0]  (%p2381_p7), %s1781_s26, 512, %s1783_s22, %s1768_s17, %s2233_s10, %s2233_s10, %s3720_s13  }
 0x4b0 PF: > { %s3721_s28 = sld [smem:[#allocation11_spill]]  ;;  %p3723_p12 = scmp.ge.s32.totalorder %s2195_s21, 2 }
 0x4b2   : > { %p1933_p13 = pnand %p3723_p12, %p2349_p6 }
 0x4b4   : > { %p1934_p0 = pneg %p1933_p13 }
 0x4b6   : > { %s1797_s0 = sand.u32 1, %s3721_s28  }
 0x4b7   : > { %s1798_s15 = scalar_lea.sflag [#allocation4], %s1797_s0 }
 0x4b8   : > { %2178 = dma.done.wait (%p1934_p0), %s1798_s15, 512  }
 0x4b9   : > { %2180 = vsyncadd (%p1934_p0), %s1798_s15, 4294966784  ;;  %s3724_s21 = sld [smem:[#allocation14_spill]]  ;;  %s3727_s18 = smov %s2187_s19 }
 0x4ba   : > { %s3725_s20 = sld [smem:[#allocation12_spill]] }
 0x4bb   : > { %s3726_s23 = sld [smem:[#allocation15_spill]] }
 0x4bf   : > { %p29_p3 = scmp.ge.s32.totalorder %s3724_s21, 4  }
 0x4c0   : > { %s3728_s19 = smov %s3725_s20 }
 0x4c1   : > { %s3729_s20 = smov %s3726_s23  ;;  %31 = sbr.rel (!%p29_p3) target bundleno = 12 (0xc), region = 133 }
 0x4c6   :  { %1804 = vsyncpa [#allocation3], 1 }
 0x4c7   :  { %1806 = vsyncpa [#allocation3 + $0x1], 1 }
 0x4c8   :  { %1807 = vsyncpa [#allocation6], 1 }
 0x4c9   :  { %1808 = vsyncpa [#allocation4], 1 }
 0x4ca   :  { %1810 = vsyncpa [#allocation4 + $0x1], 1 }

</bundles_post_ra>
